<compile_context>
chip_gen: v6e
topology: v6e:2x2x1
jax: 0.10.0
libtpu: 0.0.40
codegen_flags: <defaults>
</compile_context>

<pallas_src>
import jax
import jax.numpy as jnp
from jax import lax
from jax.experimental import pallas as pl
from jax.experimental.pallas import tpu as pltpu  # noqa: F401

N = 16                 # number of nodes (ninput == N, adj1 is N x N)
NINPUT = N
NHID = 32
NUM_INTERMEDIATE = 6
NUM_HEADS = NUM_INTERMEDIATE + 2   # 8 MLP score branches
DROPOUT = 0.5          # eval mode -> identity

# TODO(synk): dropout inside the MLP score head is a no-op here (inference semantics);
#             training-mode stochastic dropout would need pltpu.prng_* inside the kernel.


def _full_spec(shape):
    # whole-array block, no grid
    return pl.BlockSpec(shape, lambda: (0,) * len(shape))


# --------------------------------- fused kernel ---------------------------------
def _fused_kernel(adj1_ref, mask_ref, gc1w_ref, waug_ref, vsrc_ref, b_ref,
                  wscore_ref, vsrc_score_ref, w1_ref, b1_ref, w2_ref, b2_ref,
                  out_ref):
    mask_add = mask_ref[...]                                   # (N, N): 0 or -1e30

    def l2norm(x):
        ssq = jnp.sum(x * x, axis=1, keepdims=True)
        return x * lax.rsqrt(jnp.maximum(ssq, 1e-24))          # rsqrt -> EUP slot

    def gat_attend(h, e_dst, e_src_row, b, normalize):
        # h: (N, H), e_dst: (N, 1), e_src_row: (1, N)
        e = e_dst + e_src_row                                  # (N, N)
        e = jnp.maximum(e, 0.2 * e)                            # LeakyReLU(0.2), 2 VPU ops
        e = e + mask_add                                       # additive mask (self-loops kept)
        # No row-max subtraction: inputs are l2-normalized and weights small, so logits
        # stay O(1); masked entries (~ -1e30) underflow exp() to exactly 0.  The self-loop
        # guarantees at least one unmasked entry per row, so the row sum is > 0.
        p = jnp.exp(e)
        inv = pl.reciprocal(jnp.sum(p, axis=1, keepdims=True), approx=True)  # EUP slot
        alpha = p * inv
        out = jnp.dot(alpha, h, preferred_element_type=jnp.float32) + b
        out = jnp.maximum(out, 0.0)                            # ReLU
        return l2norm(out) if normalize else out

    # ---- init layer: x = l2norm(relu(adj1 @ W)) ----
    x = jnp.dot(adj1_ref[...], gc1w_ref[...], preferred_element_type=jnp.float32)
    x = l2norm(jnp.maximum(x, 0.0))

    # ---- 7 sequential GAT layers (statically unrolled); last one: no normalize ----
    x_last = None
    for k in range(NUM_INTERMEDIATE + 1):
        haug = jnp.dot(x, waug_ref[k], preferred_element_type=jnp.float32)   # (N, H+1)
        h = haug[:, :NHID]
        e_dst = haug[:, NHID:NHID + 1]
        # e_src from x (independent of the W matmul): v_src_k = a_src_k @ W_k^T
        e_src = lax.dot_general(vsrc_ref[k], x, (((1,), (1,)), ((), ())),
                                preferred_element_type=jnp.float32)          # (1, N)
        out = gat_attend(h, e_dst, e_src, b_ref[k],
                         normalize=(k < NUM_INTERMEDIATE))
        if k < NUM_INTERMEDIATE:
            x = out
        else:
            x_last = out

    # ---- batched re-application of the 6 intermediate layers on the final x ----
    # one (16,32)@(32,198) matmul gives all six h_k AND all six e_dst columns;
    # one (6,32)x(16,32) dot_general gives all six e_src rows.
    haug_all = jnp.dot(x, wscore_ref[...], preferred_element_type=jnp.float32)  # (N, 6H+6)
    esrc_all = lax.dot_general(vsrc_score_ref[...], x, (((1,), (1,)), ((), ())),
                               preferred_element_type=jnp.float32)              # (6, N)

    mlp_inputs = [x]                                            # score_layer(x)
    for k in range(NUM_INTERMEDIATE):
        h_k = haug_all[:, k * NHID:(k + 1) * NHID]
        e_dst_k = haug_all[:, NUM_INTERMEDIATE * NHID + k:
                           NUM_INTERMEDIATE * NHID + k + 1]
        e_src_k = esrc_all[k:k + 1, :]
        mlp_inputs.append(gat_attend(h_k, e_dst_k, e_src_k, b_ref[k], normalize=True))
    mlp_inputs.append(x_last)                                   # score_layer(x_last)

    # ---- batched MLP heads: ONE (128,32)@(32,32) matmul, sum the 8 row-blocks ----
    stacked = jnp.concatenate(mlp_inputs, axis=0)               # (8*N, H) = (128, 32)
    hid = jnp.dot(stacked, w1_ref[...], preferred_element_type=jnp.float32) + b1_ref[...]
    hid = jnp.maximum(hid, 0.0)
    acc = hid[0:N, :]
    for k in range(1, NUM_HEADS):
        acc = acc + hid[k * N:(k + 1) * N, :]

    # single final (N,32)@(32,1) matmul + single (N,1) store
    score = jnp.dot(acc, w2_ref[...], preferred_element_type=jnp.float32) \
        + float(NUM_HEADS) * b2_ref[...]
    out_ref[...] = score


# ---------------------------------- full forward ----------------------------------
def gat_close_forward(params, adj1, adj2):
    n = adj1.shape[0]
    gat_all = list(params["gat"]) + [params["gat_last"]]

    # fold a_dst into the layer weights; precompute v_src = a_src @ W^T
    w_aug_list, v_src_list, b_list = [], [], []
    for (w, a_src, a_dst, b) in gat_all:
        w_aug_list.append(jnp.concatenate([w, w @ a_dst.T], axis=1))   # (H, H+1)
        v_src_list.append(a_src @ w.T)                                  # (1, H)
        b_list.append(b)
    waug_stack = jnp.stack(w_aug_list)                                  # (7, H, H+1)
    vsrc_stack = jnp.stack(v_src_list)                                  # (7, 1, H)
    b_stack = jnp.stack(b_list)                                         # (7, 1, H)

    # score-branch batched weights: [W_0 .. W_5 | W_0 a_dst_0 .. W_5 a_dst_5]
    # (layout keeps each 32-wide h_k slice from crossing a 128-lane boundary)
    wscore_aug = jnp.concatenate(
        [gat_all[k][0] for k in range(NUM_INTERMEDIATE)]
        + [gat_all[k][0] @ gat_all[k][2].T for k in range(NUM_INTERMEDIATE)],
        axis=1)                                                          # (H, 6H+6)
    vsrc_score = jnp.concatenate(v_src_list[:NUM_INTERMEDIATE], axis=0)  # (6, H)

    # additive attention-mask bias, computed ONCE (adj2 is constant across all 13 GATs)
    eye = jnp.eye(n, dtype=jnp.float32)
    mask_add = jnp.where((adj2 + eye) > 0, 0.0, -1e30).astype(jnp.float32)

    w1, b1, w2, b2 = params["mlp"]

    args = (adj1, mask_add, params["gc1_w"], waug_stack, vsrc_stack, b_stack,
            wscore_aug, vsrc_score, w1, b1, w2, b2)

    return pl.pallas_call(
        _fused_kernel,
        out_shape=jax.ShapeDtypeStruct((n, 1), jnp.float32),
        in_specs=[_full_spec(a.shape) for a in args],
        out_specs=_full_spec((n, 1)),
    )(*args)


# ------------------------------ pure-JAX reference ------------------------------
def _dot(a, b):
    return jnp.dot(a, b, precision=jax.lax.Precision.HIGHEST)


def reference_forward(params, adj1, adj2):
    n = adj2.shape[0]
    eye = jnp.eye(n, dtype=bool)
    mask = (adj2 > 0) | eye

    def l2norm(x):
        nrm = jnp.sqrt(jnp.sum(x * x, axis=1, keepdims=True))
        return x / jnp.maximum(nrm, 1e-12)

    def gat(x, p, normalize):
        w, a_src, a_dst, b = p
        h = _dot(x, w)
        e_src = jnp.sum(h * a_src, axis=1, keepdims=True)
        e_dst = jnp.sum(h * a_dst, axis=1, keepdims=True)
        e = e_dst + e_src.T
        e = jnp.where(e > 0, e, 0.2 * e)
        e = jnp.where(mask, e, -1e30)
        e = e - jnp.max(e, axis=1, keepdims=True)
        pr = jnp.where(mask, jnp.exp(e), 0.0)
        alpha = pr / jnp.maximum(jnp.sum(pr, axis=1, keepdims=True), 1e-16)
        out = jnp.maximum(_dot(alpha, h) + b, 0.0)
        return l2norm(out) if normalize else out

    def mlp(x):
        w1, b1, w2, b2 = params["mlp"]
        h = jnp.maximum(_dot(x, w1) + b1, 0.0)
        return _dot(h, w2) + b2

    x = l2norm(jnp.maximum(_dot(adj1, params["gc1_w"]), 0.0))
    for k in range(NUM_INTERMEDIATE):
        x = gat(x, params["gat"][k], True)
    x_last = gat(x, params["gat_last"], False)
    scores = [mlp(x)]
    for k in range(NUM_INTERMEDIATE):
        scores.append(mlp(gat(x, params["gat"][k], True)))
    scores.append(mlp(x_last))
    out = scores[0]
    for s in scores[1:]:
        out = out + s
    return out


# ------------------------------- deterministic params ------------------------------
def make_params(key):
    ks = jax.random.split(key, 4 + 4 * (NUM_INTERMEDIATE + 1))
    it = iter(ks)

    def dense(k, shape, scale=0.1):
        return (scale * jax.random.normal(k, shape)).astype(jnp.float32)

    params = {"gc1_w": dense(next(it), (NINPUT, NHID))}

    def gat_params():
        return (dense(next(it), (NHID, NHID)),       # W
                dense(next(it), (1, NHID)),          # a_src
                dense(next(it), (1, NHID)),          # a_dst
                jnp.zeros((1, NHID), jnp.float32))   # bias

    params["gat"] = [gat_params() for _ in range(NUM_INTERMEDIATE)]
    params["gat_last"] = gat_params()
    params["mlp"] = (dense(next(it), (NHID, NHID)),
                     jnp.zeros((1, NHID), jnp.float32),
                     dense(next(it), (NHID, 1)),
                     jnp.zeros((1, 1), jnp.float32))
    return params


if __name__ == "__main__":
    key = jax.random.PRNGKey(0)
    k_adj1, k_adj2, k_params = jax.random.split(key, 3)

    # adj1: N x N "feature" adjacency fed to the init layer; adj2: symmetric 0/1 graph.
    adj1 = (jax.random.uniform(k_adj1, (N, N)) > 0.6).astype(jnp.float32)
    a = (jax.random.uniform(k_adj2, (N, N)) > 0.7).astype(jnp.float32)
    adj2 = jnp.clip(a + a.T, 0.0, 1.0)

    params = make_params(k_params)

    forward = jax.jit(gat_close_forward)
    score_top = jax.block_until_ready(forward(params, adj1, adj2))
    assert score_top.shape == (N, 1) and bool(jnp.all(jnp.isfinite(score_top)))

    # correctness check against a pure-JAX reference of the same forward
    ref = reference_forward(params, adj1, adj2)
    err = float(jnp.max(jnp.abs(score_top - ref)))
    scale = float(jnp.max(jnp.abs(ref)))
    assert err <= 1e-2 * (1.0 + scale), f"kernel/reference mismatch: err={err}, scale={scale}"

    print("KERNEL_OK")
</pallas_src>

<mosaic_0001>
module attributes {stable_mosaic.version = 11 : i64} {
  func.func @_fused_kernel(%arg0: memref<16x16xf32, #tpu.memory_space<vmem>>, %arg1: memref<16x16xf32, #tpu.memory_space<vmem>>, %arg2: memref<16x32xf32, #tpu.memory_space<vmem>>, %arg3: memref<7x32x33xf32, #tpu.memory_space<vmem>>, %arg4: memref<7x1x32xf32, #tpu.memory_space<vmem>>, %arg5: memref<7x1x32xf32, #tpu.memory_space<vmem>>, %arg6: memref<32x198xf32, #tpu.memory_space<vmem>>, %arg7: memref<6x32xf32, #tpu.memory_space<vmem>>, %arg8: memref<32x32xf32, #tpu.memory_space<vmem>>, %arg9: memref<1x32xf32, #tpu.memory_space<vmem>>, %arg10: memref<32x1xf32, #tpu.memory_space<vmem>>, %arg11: memref<1x1xf32, #tpu.memory_space<vmem>>, %arg12: memref<16x1xf32, #tpu.memory_space<vmem>>) attributes {dimension_semantics = [], scalar_prefetch = 0 : i64, scratch_operands = 0 : i64, tpu.core_type = #tpu.core_type<tc>} {
    %c0 = arith.constant 0 : index
    %c0_0 = arith.constant 0 : index
    %0 = vector.load %arg1[%c0, %c0_0] : memref<16x16xf32, #tpu.memory_space<vmem>>, vector<16x16xf32>
    %c0_1 = arith.constant 0 : index
    %c0_2 = arith.constant 0 : index
    %1 = vector.load %arg0[%c0_1, %c0_2] : memref<16x16xf32, #tpu.memory_space<vmem>>, vector<16x16xf32>
    %c0_3 = arith.constant 0 : index
    %c0_4 = arith.constant 0 : index
    %2 = vector.load %arg2[%c0_3, %c0_4] : memref<16x32xf32, #tpu.memory_space<vmem>>, vector<16x32xf32>
    %cst = arith.constant dense<0.000000e+00> : vector<16x32xf32>
    %3 = tpu.matmul %1, %2, %cst {dimension_numbers = #tpu.dot_dimension_numbers<[1], [0], [0], [1], [0, 0, 1, 1], [], []>} : vector<16x16xf32>, vector<16x32xf32>, vector<16x32xf32> -> vector<16x32xf32>
    %cst_5 = arith.constant 0.000000e+00 : f32
    %4 = vector.broadcast %cst_5 : f32 to vector<16x32xf32>
    %5 = arith.maximumf %3, %4 : vector<16x32xf32>
    %6 = arith.mulf %5, %5 : vector<16x32xf32>
    %cst_6 = arith.constant dense<0.000000e+00> : vector<16xf32>
    %7 = vector.multi_reduction <add>, %6, %cst_6 [1] : vector<16x32xf32> to vector<16xf32>
    %8 = vector.shape_cast %7 : vector<16xf32> to vector<16x1xf32>
    %cst_7 = arith.constant 1.000000e-24 : f32
    %9 = vector.broadcast %cst_7 : f32 to vector<16x1xf32>
    %10 = arith.maximumf %8, %9 : vector<16x1xf32>
    %11 = math.rsqrt %10 : vector<16x1xf32>
    %12 = vector.broadcast %11 : vector<16x1xf32> to vector<16x32xf32>
    %13 = arith.mulf %5, %12 : vector<16x32xf32>
    %c0_8 = arith.constant 0 : index
    %c0_9 = arith.constant 0 : index
    %c0_10 = arith.constant 0 : index
    %14 = vector.load %arg3[%c0_8, %c0_9, %c0_10] : memref<7x32x33xf32, #tpu.memory_space<vmem>>, vector<1x32x33xf32>
    %15 = vector.shape_cast %14 : vector<1x32x33xf32> to vector<32x33xf32>
    %cst_11 = arith.constant dense<0.000000e+00> : vector<16x33xf32>
    %16 = tpu.matmul %13, %15, %cst_11 {dimension_numbers = #tpu.dot_dimension_numbers<[1], [0], [0], [1], [0, 0, 1, 1], [], []>} : vector<16x32xf32>, vector<32x33xf32>, vector<16x33xf32> -> vector<16x33xf32>
    %17 = vector.extract_strided_slice %16 {offsets = [0, 0], sizes = [16, 32], strides = [1, 1]} : vector<16x33xf32> to vector<16x32xf32>
    %18 = vector.extract_strided_slice %16 {offsets = [0, 32], sizes = [16, 1], strides = [1, 1]} : vector<16x33xf32> to vector<16x1xf32>
    %c0_12 = arith.constant 0 : index
    %c0_13 = arith.constant 0 : index
    %c0_14 = arith.constant 0 : index
    %19 = vector.load %arg4[%c0_12, %c0_13, %c0_14] : memref<7x1x32xf32, #tpu.memory_space<vmem>>, vector<1x1x32xf32>
    %20 = vector.shape_cast %19 : vector<1x1x32xf32> to vector<1x32xf32>
    %cst_15 = arith.constant dense<0.000000e+00> : vector<1x16xf32>
    %21 = tpu.matmul %20, %13, %cst_15 {dimension_numbers = #tpu.dot_dimension_numbers<[1], [1], [0], [0], [0, 0, 1, 0], [], []>} : vector<1x32xf32>, vector<16x32xf32>, vector<1x16xf32> -> vector<1x16xf32>
    %c0_16 = arith.constant 0 : index
    %c0_17 = arith.constant 0 : index
    %c0_18 = arith.constant 0 : index
    %22 = vector.load %arg5[%c0_16, %c0_17, %c0_18] : memref<7x1x32xf32, #tpu.memory_space<vmem>>, vector<1x1x32xf32>
    %23 = vector.shape_cast %22 : vector<1x1x32xf32> to vector<1x32xf32>
    %24 = vector.broadcast %18 : vector<16x1xf32> to vector<16x16xf32>
    %25 = vector.broadcast %21 : vector<1x16xf32> to vector<16x16xf32>
    %26 = arith.addf %24, %25 : vector<16x16xf32>
    %cst_19 = arith.constant 2.000000e-01 : f32
    %27 = vector.broadcast %cst_19 : f32 to vector<16x16xf32>
    %28 = arith.mulf %27, %26 : vector<16x16xf32>
    %29 = arith.maximumf %26, %28 : vector<16x16xf32>
    %30 = arith.addf %29, %0 : vector<16x16xf32>
    %31 = math.exp %30 : vector<16x16xf32>
    %cst_20 = arith.constant dense<0.000000e+00> : vector<16xf32>
    %32 = vector.multi_reduction <add>, %31, %cst_20 [1] : vector<16x16xf32> to vector<16xf32>
    %33 = vector.shape_cast %32 : vector<16xf32> to vector<16x1xf32>
    %34 = tpu.reciprocal %33 {approx = true} : vector<16x1xf32> -> vector<16x1xf32>
    %35 = vector.broadcast %34 : vector<16x1xf32> to vector<16x16xf32>
    %36 = arith.mulf %31, %35 : vector<16x16xf32>
    %cst_21 = arith.constant dense<0.000000e+00> : vector<16x32xf32>
    %37 = tpu.matmul %36, %17, %cst_21 {dimension_numbers = #tpu.dot_dimension_numbers<[1], [0], [0], [1], [0, 0, 1, 1], [], []>} : vector<16x16xf32>, vector<16x32xf32>, vector<16x32xf32> -> vector<16x32xf32>
    %38 = vector.broadcast %23 : vector<1x32xf32> to vector<16x32xf32>
    %39 = arith.addf %37, %38 : vector<16x32xf32>
    %cst_22 = arith.constant 0.000000e+00 : f32
    %40 = vector.broadcast %cst_22 : f32 to vector<16x32xf32>
    %41 = arith.maximumf %39, %40 : vector<16x32xf32>
    %42 = arith.mulf %41, %41 : vector<16x32xf32>
    %cst_23 = arith.constant dense<0.000000e+00> : vector<16xf32>
    %43 = vector.multi_reduction <add>, %42, %cst_23 [1] : vector<16x32xf32> to vector<16xf32>
    %44 = vector.shape_cast %43 : vector<16xf32> to vector<16x1xf32>
    %cst_24 = arith.constant 1.000000e-24 : f32
    %45 = vector.broadcast %cst_24 : f32 to vector<16x1xf32>
    %46 = arith.maximumf %44, %45 : vector<16x1xf32>
    %47 = math.rsqrt %46 : vector<16x1xf32>
    %48 = vector.broadcast %47 : vector<16x1xf32> to vector<16x32xf32>
    %49 = arith.mulf %41, %48 : vector<16x32xf32>
    %c1 = arith.constant 1 : index
    %c0_25 = arith.constant 0 : index
    %c0_26 = arith.constant 0 : index
    %50 = vector.load %arg3[%c1, %c0_25, %c0_26] : memref<7x32x33xf32, #tpu.memory_space<vmem>>, vector<1x32x33xf32>
    %51 = vector.shape_cast %50 : vector<1x32x33xf32> to vector<32x33xf32>
    %cst_27 = arith.constant dense<0.000000e+00> : vector<16x33xf32>
    %52 = tpu.matmul %49, %51, %cst_27 {dimension_numbers = #tpu.dot_dimension_numbers<[1], [0], [0], [1], [0, 0, 1, 1], [], []>} : vector<16x32xf32>, vector<32x33xf32>, vector<16x33xf32> -> vector<16x33xf32>
    %53 = vector.extract_strided_slice %52 {offsets = [0, 0], sizes = [16, 32], strides = [1, 1]} : vector<16x33xf32> to vector<16x32xf32>
    %54 = vector.extract_strided_slice %52 {offsets = [0, 32], sizes = [16, 1], strides = [1, 1]} : vector<16x33xf32> to vector<16x1xf32>
    %c1_28 = arith.constant 1 : index
    %c0_29 = arith.constant 0 : index
    %c0_30 = arith.constant 0 : index
    %55 = vector.load %arg4[%c1_28, %c0_29, %c0_30] : memref<7x1x32xf32, #tpu.memory_space<vmem>>, vector<1x1x32xf32>
    %56 = vector.shape_cast %55 : vector<1x1x32xf32> to vector<1x32xf32>
    %cst_31 = arith.constant dense<0.000000e+00> : vector<1x16xf32>
    %57 = tpu.matmul %56, %49, %cst_31 {dimension_numbers = #tpu.dot_dimension_numbers<[1], [1], [0], [0], [0, 0, 1, 0], [], []>} : vector<1x32xf32>, vector<16x32xf32>, vector<1x16xf32> -> vector<1x16xf32>
    %c1_32 = arith.constant 1 : index
    %c0_33 = arith.constant 0 : index
    %c0_34 = arith.constant 0 : index
    %58 = vector.load %arg5[%c1_32, %c0_33, %c0_34] : memref<7x1x32xf32, #tpu.memory_space<vmem>>, vector<1x1x32xf32>
    %59 = vector.shape_cast %58 : vector<1x1x32xf32> to vector<1x32xf32>
    %60 = vector.broadcast %54 : vector<16x1xf32> to vector<16x16xf32>
    %61 = vector.broadcast %57 : vector<1x16xf32> to vector<16x16xf32>
    %62 = arith.addf %60, %61 : vector<16x16xf32>
    %cst_35 = arith.constant 2.000000e-01 : f32
    %63 = vector.broadcast %cst_35 : f32 to vector<16x16xf32>
    %64 = arith.mulf %63, %62 : vector<16x16xf32>
    %65 = arith.maximumf %62, %64 : vector<16x16xf32>
    %66 = arith.addf %65, %0 : vector<16x16xf32>
    %67 = math.exp %66 : vector<16x16xf32>
    %cst_36 = arith.constant dense<0.000000e+00> : vector<16xf32>
    %68 = vector.multi_reduction <add>, %67, %cst_36 [1] : vector<16x16xf32> to vector<16xf32>
    %69 = vector.shape_cast %68 : vector<16xf32> to vector<16x1xf32>
    %70 = tpu.reciprocal %69 {approx = true} : vector<16x1xf32> -> vector<16x1xf32>
    %71 = vector.broadcast %70 : vector<16x1xf32> to vector<16x16xf32>
    %72 = arith.mulf %67, %71 : vector<16x16xf32>
    %cst_37 = arith.constant dense<0.000000e+00> : vector<16x32xf32>
    %73 = tpu.matmul %72, %53, %cst_37 {dimension_numbers = #tpu.dot_dimension_numbers<[1], [0], [0], [1], [0, 0, 1, 1], [], []>} : vector<16x16xf32>, vector<16x32xf32>, vector<16x32xf32> -> vector<16x32xf32>
    %74 = vector.broadcast %59 : vector<1x32xf32> to vector<16x32xf32>
    %75 = arith.addf %73, %74 : vector<16x32xf32>
    %cst_38 = arith.constant 0.000000e+00 : f32
    %76 = vector.broadcast %cst_38 : f32 to vector<16x32xf32>
    %77 = arith.maximumf %75, %76 : vector<16x32xf32>
    %78 = arith.mulf %77, %77 : vector<16x32xf32>
    %cst_39 = arith.constant dense<0.000000e+00> : vector<16xf32>
    %79 = vector.multi_reduction <add>, %78, %cst_39 [1] : vector<16x32xf32> to vector<16xf32>
    %80 = vector.shape_cast %79 : vector<16xf32> to vector<16x1xf32>
    %cst_40 = arith.constant 1.000000e-24 : f32
    %81 = vector.broadcast %cst_40 : f32 to vector<16x1xf32>
    %82 = arith.maximumf %80, %81 : vector<16x1xf32>
    %83 = math.rsqrt %82 : vector<16x1xf32>
    %84 = vector.broadcast %83 : vector<16x1xf32> to vector<16x32xf32>
    %85 = arith.mulf %77, %84 : vector<16x32xf32>
    %c2 = arith.constant 2 : index
    %c0_41 = arith.constant 0 : index
    %c0_42 = arith.constant 0 : index
    %86 = vector.load %arg3[%c2, %c0_41, %c0_42] : memref<7x32x33xf32, #tpu.memory_space<vmem>>, vector<1x32x33xf32>
    %87 = vector.shape_cast %86 : vector<1x32x33xf32> to vector<32x33xf32>
    %cst_43 = arith.constant dense<0.000000e+00> : vector<16x33xf32>
    %88 = tpu.matmul %85, %87, %cst_43 {dimension_numbers = #tpu.dot_dimension_numbers<[1], [0], [0], [1], [0, 0, 1, 1], [], []>} : vector<16x32xf32>, vector<32x33xf32>, vector<16x33xf32> -> vector<16x33xf32>
    %89 = vector.extract_strided_slice %88 {offsets = [0, 0], sizes = [16, 32], strides = [1, 1]} : vector<16x33xf32> to vector<16x32xf32>
    %90 = vector.extract_strided_slice %88 {offsets = [0, 32], sizes = [16, 1], strides = [1, 1]} : vector<16x33xf32> to vector<16x1xf32>
    %c2_44 = arith.constant 2 : index
    %c0_45 = arith.constant 0 : index
    %c0_46 = arith.constant 0 : index
    %91 = vector.load %arg4[%c2_44, %c0_45, %c0_46] : memref<7x1x32xf32, #tpu.memory_space<vmem>>, vector<1x1x32xf32>
    %92 = vector.shape_cast %91 : vector<1x1x32xf32> to vector<1x32xf32>
    %cst_47 = arith.constant dense<0.000000e+00> : vector<1x16xf32>
    %93 = tpu.matmul %92, %85, %cst_47 {dimension_numbers = #tpu.dot_dimension_numbers<[1], [1], [0], [0], [0, 0, 1, 0], [], []>} : vector<1x32xf32>, vector<16x32xf32>, vector<1x16xf32> -> vector<1x16xf32>
    %c2_48 = arith.constant 2 : index
    %c0_49 = arith.constant 0 : index
    %c0_50 = arith.constant 0 : index
    %94 = vector.load %arg5[%c2_48, %c0_49, %c0_50] : memref<7x1x32xf32, #tpu.memory_space<vmem>>, vector<1x1x32xf32>
    %95 = vector.shape_cast %94 : vector<1x1x32xf32> to vector<1x32xf32>
    %96 = vector.broadcast %90 : vector<16x1xf32> to vector<16x16xf32>
    %97 = vector.broadcast %93 : vector<1x16xf32> to vector<16x16xf32>
    %98 = arith.addf %96, %97 : vector<16x16xf32>
    %cst_51 = arith.constant 2.000000e-01 : f32
    %99 = vector.broadcast %cst_51 : f32 to vector<16x16xf32>
    %100 = arith.mulf %99, %98 : vector<16x16xf32>
    %101 = arith.maximumf %98, %100 : vector<16x16xf32>
    %102 = arith.addf %101, %0 : vector<16x16xf32>
    %103 = math.exp %102 : vector<16x16xf32>
    %cst_52 = arith.constant dense<0.000000e+00> : vector<16xf32>
    %104 = vector.multi_reduction <add>, %103, %cst_52 [1] : vector<16x16xf32> to vector<16xf32>
    %105 = vector.shape_cast %104 : vector<16xf32> to vector<16x1xf32>
    %106 = tpu.reciprocal %105 {approx = true} : vector<16x1xf32> -> vector<16x1xf32>
    %107 = vector.broadcast %106 : vector<16x1xf32> to vector<16x16xf32>
    %108 = arith.mulf %103, %107 : vector<16x16xf32>
    %cst_53 = arith.constant dense<0.000000e+00> : vector<16x32xf32>
    %109 = tpu.matmul %108, %89, %cst_53 {dimension_numbers = #tpu.dot_dimension_numbers<[1], [0], [0], [1], [0, 0, 1, 1], [], []>} : vector<16x16xf32>, vector<16x32xf32>, vector<16x32xf32> -> vector<16x32xf32>
    %110 = vector.broadcast %95 : vector<1x32xf32> to vector<16x32xf32>
    %111 = arith.addf %109, %110 : vector<16x32xf32>
    %cst_54 = arith.constant 0.000000e+00 : f32
    %112 = vector.broadcast %cst_54 : f32 to vector<16x32xf32>
    %113 = arith.maximumf %111, %112 : vector<16x32xf32>
    %114 = arith.mulf %113, %113 : vector<16x32xf32>
    %cst_55 = arith.constant dense<0.000000e+00> : vector<16xf32>
    %115 = vector.multi_reduction <add>, %114, %cst_55 [1] : vector<16x32xf32> to vector<16xf32>
    %116 = vector.shape_cast %115 : vector<16xf32> to vector<16x1xf32>
    %cst_56 = arith.constant 1.000000e-24 : f32
    %117 = vector.broadcast %cst_56 : f32 to vector<16x1xf32>
    %118 = arith.maximumf %116, %117 : vector<16x1xf32>
    %119 = math.rsqrt %118 : vector<16x1xf32>
    %120 = vector.broadcast %119 : vector<16x1xf32> to vector<16x32xf32>
    %121 = arith.mulf %113, %120 : vector<16x32xf32>
    %c3 = arith.constant 3 : index
    %c0_57 = arith.constant 0 : index
    %c0_58 = arith.constant 0 : index
    %122 = vector.load %arg3[%c3, %c0_57, %c0_58] : memref<7x32x33xf32, #tpu.memory_space<vmem>>, vector<1x32x33xf32>
    %123 = vector.shape_cast %122 : vector<1x32x33xf32> to vector<32x33xf32>
    %cst_59 = arith.constant dense<0.000000e+00> : vector<16x33xf32>
    %124 = tpu.matmul %121, %123, %cst_59 {dimension_numbers = #tpu.dot_dimension_numbers<[1], [0], [0], [1], [0, 0, 1, 1], [], []>} : vector<16x32xf32>, vector<32x33xf32>, vector<16x33xf32> -> vector<16x33xf32>
    %125 = vector.extract_strided_slice %124 {offsets = [0, 0], sizes = [16, 32], strides = [1, 1]} : vector<16x33xf32> to vector<16x32xf32>
    %126 = vector.extract_strided_slice %124 {offsets = [0, 32], sizes = [16, 1], strides = [1, 1]} : vector<16x33xf32> to vector<16x1xf32>
    %c3_60 = arith.constant 3 : index
    %c0_61 = arith.constant 0 : index
    %c0_62 = arith.constant 0 : index
    %127 = vector.load %arg4[%c3_60, %c0_61, %c0_62] : memref<7x1x32xf32, #tpu.memory_space<vmem>>, vector<1x1x32xf32>
    %128 = vector.shape_cast %127 : vector<1x1x32xf32> to vector<1x32xf32>
    %cst_63 = arith.constant dense<0.000000e+00> : vector<1x16xf32>
    %129 = tpu.matmul %128, %121, %cst_63 {dimension_numbers = #tpu.dot_dimension_numbers<[1], [1], [0], [0], [0, 0, 1, 0], [], []>} : vector<1x32xf32>, vector<16x32xf32>, vector<1x16xf32> -> vector<1x16xf32>
    %c3_64 = arith.constant 3 : index
    %c0_65 = arith.constant 0 : index
    %c0_66 = arith.constant 0 : index
    %130 = vector.load %arg5[%c3_64, %c0_65, %c0_66] : memref<7x1x32xf32, #tpu.memory_space<vmem>>, vector<1x1x32xf32>
    %131 = vector.shape_cast %130 : vector<1x1x32xf32> to vector<1x32xf32>
    %132 = vector.broadcast %126 : vector<16x1xf32> to vector<16x16xf32>
    %133 = vector.broadcast %129 : vector<1x16xf32> to vector<16x16xf32>
    %134 = arith.addf %132, %133 : vector<16x16xf32>
    %cst_67 = arith.constant 2.000000e-01 : f32
    %135 = vector.broadcast %cst_67 : f32 to vector<16x16xf32>
    %136 = arith.mulf %135, %134 : vector<16x16xf32>
    %137 = arith.maximumf %134, %136 : vector<16x16xf32>
    %138 = arith.addf %137, %0 : vector<16x16xf32>
    %139 = math.exp %138 : vector<16x16xf32>
    %cst_68 = arith.constant dense<0.000000e+00> : vector<16xf32>
    %140 = vector.multi_reduction <add>, %139, %cst_68 [1] : vector<16x16xf32> to vector<16xf32>
    %141 = vector.shape_cast %140 : vector<16xf32> to vector<16x1xf32>
    %142 = tpu.reciprocal %141 {approx = true} : vector<16x1xf32> -> vector<16x1xf32>
    %143 = vector.broadcast %142 : vector<16x1xf32> to vector<16x16xf32>
    %144 = arith.mulf %139, %143 : vector<16x16xf32>
    %cst_69 = arith.constant dense<0.000000e+00> : vector<16x32xf32>
    %145 = tpu.matmul %144, %125, %cst_69 {dimension_numbers = #tpu.dot_dimension_numbers<[1], [0], [0], [1], [0, 0, 1, 1], [], []>} : vector<16x16xf32>, vector<16x32xf32>, vector<16x32xf32> -> vector<16x32xf32>
    %146 = vector.broadcast %131 : vector<1x32xf32> to vector<16x32xf32>
    %147 = arith.addf %145, %146 : vector<16x32xf32>
    %cst_70 = arith.constant 0.000000e+00 : f32
    %148 = vector.broadcast %cst_70 : f32 to vector<16x32xf32>
    %149 = arith.maximumf %147, %148 : vector<16x32xf32>
    %150 = arith.mulf %149, %149 : vector<16x32xf32>
    %cst_71 = arith.constant dense<0.000000e+00> : vector<16xf32>
    %151 = vector.multi_reduction <add>, %150, %cst_71 [1] : vector<16x32xf32> to vector<16xf32>
    %152 = vector.shape_cast %151 : vector<16xf32> to vector<16x1xf32>
    %cst_72 = arith.constant 1.000000e-24 : f32
    %153 = vector.broadcast %cst_72 : f32 to vector<16x1xf32>
    %154 = arith.maximumf %152, %153 : vector<16x1xf32>
    %155 = math.rsqrt %154 : vector<16x1xf32>
    %156 = vector.broadcast %155 : vector<16x1xf32> to vector<16x32xf32>
    %157 = arith.mulf %149, %156 : vector<16x32xf32>
    %c4 = arith.constant 4 : index
    %c0_73 = arith.constant 0 : index
    %c0_74 = arith.constant 0 : index
    %158 = vector.load %arg3[%c4, %c0_73, %c0_74] : memref<7x32x33xf32, #tpu.memory_space<vmem>>, vector<1x32x33xf32>
    %159 = vector.shape_cast %158 : vector<1x32x33xf32> to vector<32x33xf32>
    %cst_75 = arith.constant dense<0.000000e+00> : vector<16x33xf32>
    %160 = tpu.matmul %157, %159, %cst_75 {dimension_numbers = #tpu.dot_dimension_numbers<[1], [0], [0], [1], [0, 0, 1, 1], [], []>} : vector<16x32xf32>, vector<32x33xf32>, vector<16x33xf32> -> vector<16x33xf32>
    %161 = vector.extract_strided_slice %160 {offsets = [0, 0], sizes = [16, 32], strides = [1, 1]} : vector<16x33xf32> to vector<16x32xf32>
    %162 = vector.extract_strided_slice %160 {offsets = [0, 32], sizes = [16, 1], strides = [1, 1]} : vector<16x33xf32> to vector<16x1xf32>
    %c4_76 = arith.constant 4 : index
    %c0_77 = arith.constant 0 : index
    %c0_78 = arith.constant 0 : index
    %163 = vector.load %arg4[%c4_76, %c0_77, %c0_78] : memref<7x1x32xf32, #tpu.memory_space<vmem>>, vector<1x1x32xf32>
    %164 = vector.shape_cast %163 : vector<1x1x32xf32> to vector<1x32xf32>
    %cst_79 = arith.constant dense<0.000000e+00> : vector<1x16xf32>
    %165 = tpu.matmul %164, %157, %cst_79 {dimension_numbers = #tpu.dot_dimension_numbers<[1], [1], [0], [0], [0, 0, 1, 0], [], []>} : vector<1x32xf32>, vector<16x32xf32>, vector<1x16xf32> -> vector<1x16xf32>
    %c4_80 = arith.constant 4 : index
    %c0_81 = arith.constant 0 : index
    %c0_82 = arith.constant 0 : index
    %166 = vector.load %arg5[%c4_80, %c0_81, %c0_82] : memref<7x1x32xf32, #tpu.memory_space<vmem>>, vector<1x1x32xf32>
    %167 = vector.shape_cast %166 : vector<1x1x32xf32> to vector<1x32xf32>
    %168 = vector.broadcast %162 : vector<16x1xf32> to vector<16x16xf32>
    %169 = vector.broadcast %165 : vector<1x16xf32> to vector<16x16xf32>
    %170 = arith.addf %168, %169 : vector<16x16xf32>
    %cst_83 = arith.constant 2.000000e-01 : f32
    %171 = vector.broadcast %cst_83 : f32 to vector<16x16xf32>
    %172 = arith.mulf %171, %170 : vector<16x16xf32>
    %173 = arith.maximumf %170, %172 : vector<16x16xf32>
    %174 = arith.addf %173, %0 : vector<16x16xf32>
    %175 = math.exp %174 : vector<16x16xf32>
    %cst_84 = arith.constant dense<0.000000e+00> : vector<16xf32>
    %176 = vector.multi_reduction <add>, %175, %cst_84 [1] : vector<16x16xf32> to vector<16xf32>
    %177 = vector.shape_cast %176 : vector<16xf32> to vector<16x1xf32>
    %178 = tpu.reciprocal %177 {approx = true} : vector<16x1xf32> -> vector<16x1xf32>
    %179 = vector.broadcast %178 : vector<16x1xf32> to vector<16x16xf32>
    %180 = arith.mulf %175, %179 : vector<16x16xf32>
    %cst_85 = arith.constant dense<0.000000e+00> : vector<16x32xf32>
    %181 = tpu.matmul %180, %161, %cst_85 {dimension_numbers = #tpu.dot_dimension_numbers<[1], [0], [0], [1], [0, 0, 1, 1], [], []>} : vector<16x16xf32>, vector<16x32xf32>, vector<16x32xf32> -> vector<16x32xf32>
    %182 = vector.broadcast %167 : vector<1x32xf32> to vector<16x32xf32>
    %183 = arith.addf %181, %182 : vector<16x32xf32>
    %cst_86 = arith.constant 0.000000e+00 : f32
    %184 = vector.broadcast %cst_86 : f32 to vector<16x32xf32>
    %185 = arith.maximumf %183, %184 : vector<16x32xf32>
    %186 = arith.mulf %185, %185 : vector<16x32xf32>
    %cst_87 = arith.constant dense<0.000000e+00> : vector<16xf32>
    %187 = vector.multi_reduction <add>, %186, %cst_87 [1] : vector<16x32xf32> to vector<16xf32>
    %188 = vector.shape_cast %187 : vector<16xf32> to vector<16x1xf32>
    %cst_88 = arith.constant 1.000000e-24 : f32
    %189 = vector.broadcast %cst_88 : f32 to vector<16x1xf32>
    %190 = arith.maximumf %188, %189 : vector<16x1xf32>
    %191 = math.rsqrt %190 : vector<16x1xf32>
    %192 = vector.broadcast %191 : vector<16x1xf32> to vector<16x32xf32>
    %193 = arith.mulf %185, %192 : vector<16x32xf32>
    %c5 = arith.constant 5 : index
    %c0_89 = arith.constant 0 : index
    %c0_90 = arith.constant 0 : index
    %194 = vector.load %arg3[%c5, %c0_89, %c0_90] : memref<7x32x33xf32, #tpu.memory_space<vmem>>, vector<1x32x33xf32>
    %195 = vector.shape_cast %194 : vector<1x32x33xf32> to vector<32x33xf32>
    %cst_91 = arith.constant dense<0.000000e+00> : vector<16x33xf32>
    %196 = tpu.matmul %193, %195, %cst_91 {dimension_numbers = #tpu.dot_dimension_numbers<[1], [0], [0], [1], [0, 0, 1, 1], [], []>} : vector<16x32xf32>, vector<32x33xf32>, vector<16x33xf32> -> vector<16x33xf32>
    %197 = vector.extract_strided_slice %196 {offsets = [0, 0], sizes = [16, 32], strides = [1, 1]} : vector<16x33xf32> to vector<16x32xf32>
    %198 = vector.extract_strided_slice %196 {offsets = [0, 32], sizes = [16, 1], strides = [1, 1]} : vector<16x33xf32> to vector<16x1xf32>
    %c5_92 = arith.constant 5 : index
    %c0_93 = arith.constant 0 : index
    %c0_94 = arith.constant 0 : index
    %199 = vector.load %arg4[%c5_92, %c0_93, %c0_94] : memref<7x1x32xf32, #tpu.memory_space<vmem>>, vector<1x1x32xf32>
    %200 = vector.shape_cast %199 : vector<1x1x32xf32> to vector<1x32xf32>
    %cst_95 = arith.constant dense<0.000000e+00> : vector<1x16xf32>
    %201 = tpu.matmul %200, %193, %cst_95 {dimension_numbers = #tpu.dot_dimension_numbers<[1], [1], [0], [0], [0, 0, 1, 0], [], []>} : vector<1x32xf32>, vector<16x32xf32>, vector<1x16xf32> -> vector<1x16xf32>
    %c5_96 = arith.constant 5 : index
    %c0_97 = arith.constant 0 : index
    %c0_98 = arith.constant 0 : index
    %202 = vector.load %arg5[%c5_96, %c0_97, %c0_98] : memref<7x1x32xf32, #tpu.memory_space<vmem>>, vector<1x1x32xf32>
    %203 = vector.shape_cast %202 : vector<1x1x32xf32> to vector<1x32xf32>
    %204 = vector.broadcast %198 : vector<16x1xf32> to vector<16x16xf32>
    %205 = vector.broadcast %201 : vector<1x16xf32> to vector<16x16xf32>
    %206 = arith.addf %204, %205 : vector<16x16xf32>
    %cst_99 = arith.constant 2.000000e-01 : f32
    %207 = vector.broadcast %cst_99 : f32 to vector<16x16xf32>
    %208 = arith.mulf %207, %206 : vector<16x16xf32>
    %209 = arith.maximumf %206, %208 : vector<16x16xf32>
    %210 = arith.addf %209, %0 : vector<16x16xf32>
    %211 = math.exp %210 : vector<16x16xf32>
    %cst_100 = arith.constant dense<0.000000e+00> : vector<16xf32>
    %212 = vector.multi_reduction <add>, %211, %cst_100 [1] : vector<16x16xf32> to vector<16xf32>
    %213 = vector.shape_cast %212 : vector<16xf32> to vector<16x1xf32>
    %214 = tpu.reciprocal %213 {approx = true} : vector<16x1xf32> -> vector<16x1xf32>
    %215 = vector.broadcast %214 : vector<16x1xf32> to vector<16x16xf32>
    %216 = arith.mulf %211, %215 : vector<16x16xf32>
    %cst_101 = arith.constant dense<0.000000e+00> : vector<16x32xf32>
    %217 = tpu.matmul %216, %197, %cst_101 {dimension_numbers = #tpu.dot_dimension_numbers<[1], [0], [0], [1], [0, 0, 1, 1], [], []>} : vector<16x16xf32>, vector<16x32xf32>, vector<16x32xf32> -> vector<16x32xf32>
    %218 = vector.broadcast %203 : vector<1x32xf32> to vector<16x32xf32>
    %219 = arith.addf %217, %218 : vector<16x32xf32>
    %cst_102 = arith.constant 0.000000e+00 : f32
    %220 = vector.broadcast %cst_102 : f32 to vector<16x32xf32>
    %221 = arith.maximumf %219, %220 : vector<16x32xf32>
    %222 = arith.mulf %221, %221 : vector<16x32xf32>
    %cst_103 = arith.constant dense<0.000000e+00> : vector<16xf32>
    %223 = vector.multi_reduction <add>, %222, %cst_103 [1] : vector<16x32xf32> to vector<16xf32>
    %224 = vector.shape_cast %223 : vector<16xf32> to vector<16x1xf32>
    %cst_104 = arith.constant 1.000000e-24 : f32
    %225 = vector.broadcast %cst_104 : f32 to vector<16x1xf32>
    %226 = arith.maximumf %224, %225 : vector<16x1xf32>
    %227 = math.rsqrt %226 : vector<16x1xf32>
    %228 = vector.broadcast %227 : vector<16x1xf32> to vector<16x32xf32>
    %229 = arith.mulf %221, %228 : vector<16x32xf32>
    %c6 = arith.constant 6 : index
    %c0_105 = arith.constant 0 : index
    %c0_106 = arith.constant 0 : index
    %230 = vector.load %arg3[%c6, %c0_105, %c0_106] : memref<7x32x33xf32, #tpu.memory_space<vmem>>, vector<1x32x33xf32>
    %231 = vector.shape_cast %230 : vector<1x32x33xf32> to vector<32x33xf32>
    %cst_107 = arith.constant dense<0.000000e+00> : vector<16x33xf32>
    %232 = tpu.matmul %229, %231, %cst_107 {dimension_numbers = #tpu.dot_dimension_numbers<[1], [0], [0], [1], [0, 0, 1, 1], [], []>} : vector<16x32xf32>, vector<32x33xf32>, vector<16x33xf32> -> vector<16x33xf32>
    %233 = vector.extract_strided_slice %232 {offsets = [0, 0], sizes = [16, 32], strides = [1, 1]} : vector<16x33xf32> to vector<16x32xf32>
    %234 = vector.extract_strided_slice %232 {offsets = [0, 32], sizes = [16, 1], strides = [1, 1]} : vector<16x33xf32> to vector<16x1xf32>
    %c6_108 = arith.constant 6 : index
    %c0_109 = arith.constant 0 : index
    %c0_110 = arith.constant 0 : index
    %235 = vector.load %arg4[%c6_108, %c0_109, %c0_110] : memref<7x1x32xf32, #tpu.memory_space<vmem>>, vector<1x1x32xf32>
    %236 = vector.shape_cast %235 : vector<1x1x32xf32> to vector<1x32xf32>
    %cst_111 = arith.constant dense<0.000000e+00> : vector<1x16xf32>
    %237 = tpu.matmul %236, %229, %cst_111 {dimension_numbers = #tpu.dot_dimension_numbers<[1], [1], [0], [0], [0, 0, 1, 0], [], []>} : vector<1x32xf32>, vector<16x32xf32>, vector<1x16xf32> -> vector<1x16xf32>
    %c6_112 = arith.constant 6 : index
    %c0_113 = arith.constant 0 : index
    %c0_114 = arith.constant 0 : index
    %238 = vector.load %arg5[%c6_112, %c0_113, %c0_114] : memref<7x1x32xf32, #tpu.memory_space<vmem>>, vector<1x1x32xf32>
    %239 = vector.shape_cast %238 : vector<1x1x32xf32> to vector<1x32xf32>
    %240 = vector.broadcast %234 : vector<16x1xf32> to vector<16x16xf32>
    %241 = vector.broadcast %237 : vector<1x16xf32> to vector<16x16xf32>
    %242 = arith.addf %240, %241 : vector<16x16xf32>
    %cst_115 = arith.constant 2.000000e-01 : f32
    %243 = vector.broadcast %cst_115 : f32 to vector<16x16xf32>
    %244 = arith.mulf %243, %242 : vector<16x16xf32>
    %245 = arith.maximumf %242, %244 : vector<16x16xf32>
    %246 = arith.addf %245, %0 : vector<16x16xf32>
    %247 = math.exp %246 : vector<16x16xf32>
    %cst_116 = arith.constant dense<0.000000e+00> : vector<16xf32>
    %248 = vector.multi_reduction <add>, %247, %cst_116 [1] : vector<16x16xf32> to vector<16xf32>
    %249 = vector.shape_cast %248 : vector<16xf32> to vector<16x1xf32>
    %250 = tpu.reciprocal %249 {approx = true} : vector<16x1xf32> -> vector<16x1xf32>
    %251 = vector.broadcast %250 : vector<16x1xf32> to vector<16x16xf32>
    %252 = arith.mulf %247, %251 : vector<16x16xf32>
    %cst_117 = arith.constant dense<0.000000e+00> : vector<16x32xf32>
    %253 = tpu.matmul %252, %233, %cst_117 {dimension_numbers = #tpu.dot_dimension_numbers<[1], [0], [0], [1], [0, 0, 1, 1], [], []>} : vector<16x16xf32>, vector<16x32xf32>, vector<16x32xf32> -> vector<16x32xf32>
    %254 = vector.broadcast %239 : vector<1x32xf32> to vector<16x32xf32>
    %255 = arith.addf %253, %254 : vector<16x32xf32>
    %cst_118 = arith.constant 0.000000e+00 : f32
    %256 = vector.broadcast %cst_118 : f32 to vector<16x32xf32>
    %257 = arith.maximumf %255, %256 : vector<16x32xf32>
    %c0_119 = arith.constant 0 : index
    %c0_120 = arith.constant 0 : index
    %258 = vector.load %arg6[%c0_119, %c0_120] : memref<32x198xf32, #tpu.memory_space<vmem>>, vector<32x198xf32>
    %cst_121 = arith.constant dense<0.000000e+00> : vector<16x198xf32>
    %259 = tpu.matmul %229, %258, %cst_121 {dimension_numbers = #tpu.dot_dimension_numbers<[1], [0], [0], [1], [0, 0, 1, 1], [], []>} : vector<16x32xf32>, vector<32x198xf32>, vector<16x198xf32> -> vector<16x198xf32>
    %c0_122 = arith.constant 0 : index
    %c0_123 = arith.constant 0 : index
    %260 = vector.load %arg7[%c0_122, %c0_123] : memref<6x32xf32, #tpu.memory_space<vmem>>, vector<6x32xf32>
    %cst_124 = arith.constant dense<0.000000e+00> : vector<6x16xf32>
    %261 = tpu.matmul %260, %229, %cst_124 {dimension_numbers = #tpu.dot_dimension_numbers<[1], [1], [0], [0], [0, 0, 1, 0], [], []>} : vector<6x32xf32>, vector<16x32xf32>, vector<6x16xf32> -> vector<6x16xf32>
    %262 = vector.extract_strided_slice %259 {offsets = [0, 0], sizes = [16, 32], strides = [1, 1]} : vector<16x198xf32> to vector<16x32xf32>
    %263 = vector.extract_strided_slice %259 {offsets = [0, 192], sizes = [16, 1], strides = [1, 1]} : vector<16x198xf32> to vector<16x1xf32>
    %264 = vector.extract_strided_slice %261 {offsets = [0, 0], sizes = [1, 16], strides = [1, 1]} : vector<6x16xf32> to vector<1x16xf32>
    %c0_125 = arith.constant 0 : index
    %c0_126 = arith.constant 0 : index
    %c0_127 = arith.constant 0 : index
    %265 = vector.load %arg5[%c0_125, %c0_126, %c0_127] : memref<7x1x32xf32, #tpu.memory_space<vmem>>, vector<1x1x32xf32>
    %266 = vector.shape_cast %265 : vector<1x1x32xf32> to vector<1x32xf32>
    %267 = vector.broadcast %263 : vector<16x1xf32> to vector<16x16xf32>
    %268 = vector.broadcast %264 : vector<1x16xf32> to vector<16x16xf32>
    %269 = arith.addf %267, %268 : vector<16x16xf32>
    %cst_128 = arith.constant 2.000000e-01 : f32
    %270 = vector.broadcast %cst_128 : f32 to vector<16x16xf32>
    %271 = arith.mulf %270, %269 : vector<16x16xf32>
    %272 = arith.maximumf %269, %271 : vector<16x16xf32>
    %273 = arith.addf %272, %0 : vector<16x16xf32>
    %274 = math.exp %273 : vector<16x16xf32>
    %cst_129 = arith.constant dense<0.000000e+00> : vector<16xf32>
    %275 = vector.multi_reduction <add>, %274, %cst_129 [1] : vector<16x16xf32> to vector<16xf32>
    %276 = vector.shape_cast %275 : vector<16xf32> to vector<16x1xf32>
    %277 = tpu.reciprocal %276 {approx = true} : vector<16x1xf32> -> vector<16x1xf32>
    %278 = vector.broadcast %277 : vector<16x1xf32> to vector<16x16xf32>
    %279 = arith.mulf %274, %278 : vector<16x16xf32>
    %cst_130 = arith.constant dense<0.000000e+00> : vector<16x32xf32>
    %280 = tpu.matmul %279, %262, %cst_130 {dimension_numbers = #tpu.dot_dimension_numbers<[1], [0], [0], [1], [0, 0, 1, 1], [], []>} : vector<16x16xf32>, vector<16x32xf32>, vector<16x32xf32> -> vector<16x32xf32>
    %281 = vector.broadcast %266 : vector<1x32xf32> to vector<16x32xf32>
    %282 = arith.addf %280, %281 : vector<16x32xf32>
    %cst_131 = arith.constant 0.000000e+00 : f32
    %283 = vector.broadcast %cst_131 : f32 to vector<16x32xf32>
    %284 = arith.maximumf %282, %283 : vector<16x32xf32>
    %285 = arith.mulf %284, %284 : vector<16x32xf32>
    %cst_132 = arith.constant dense<0.000000e+00> : vector<16xf32>
    %286 = vector.multi_reduction <add>, %285, %cst_132 [1] : vector<16x32xf32> to vector<16xf32>
    %287 = vector.shape_cast %286 : vector<16xf32> to vector<16x1xf32>
    %cst_133 = arith.constant 1.000000e-24 : f32
    %288 = vector.broadcast %cst_133 : f32 to vector<16x1xf32>
    %289 = arith.maximumf %287, %288 : vector<16x1xf32>
    %290 = math.rsqrt %289 : vector<16x1xf32>
    %291 = vector.broadcast %290 : vector<16x1xf32> to vector<16x32xf32>
    %292 = arith.mulf %284, %291 : vector<16x32xf32>
    %293 = vector.extract_strided_slice %259 {offsets = [0, 32], sizes = [16, 32], strides = [1, 1]} : vector<16x198xf32> to vector<16x32xf32>
    %294 = vector.extract_strided_slice %259 {offsets = [0, 193], sizes = [16, 1], strides = [1, 1]} : vector<16x198xf32> to vector<16x1xf32>
    %295 = vector.extract_strided_slice %261 {offsets = [1, 0], sizes = [1, 16], strides = [1, 1]} : vector<6x16xf32> to vector<1x16xf32>
    %c1_134 = arith.constant 1 : index
    %c0_135 = arith.constant 0 : index
    %c0_136 = arith.constant 0 : index
    %296 = vector.load %arg5[%c1_134, %c0_135, %c0_136] : memref<7x1x32xf32, #tpu.memory_space<vmem>>, vector<1x1x32xf32>
    %297 = vector.shape_cast %296 : vector<1x1x32xf32> to vector<1x32xf32>
    %298 = vector.broadcast %294 : vector<16x1xf32> to vector<16x16xf32>
    %299 = vector.broadcast %295 : vector<1x16xf32> to vector<16x16xf32>
    %300 = arith.addf %298, %299 : vector<16x16xf32>
    %cst_137 = arith.constant 2.000000e-01 : f32
    %301 = vector.broadcast %cst_137 : f32 to vector<16x16xf32>
    %302 = arith.mulf %301, %300 : vector<16x16xf32>
    %303 = arith.maximumf %300, %302 : vector<16x16xf32>
    %304 = arith.addf %303, %0 : vector<16x16xf32>
    %305 = math.exp %304 : vector<16x16xf32>
    %cst_138 = arith.constant dense<0.000000e+00> : vector<16xf32>
    %306 = vector.multi_reduction <add>, %305, %cst_138 [1] : vector<16x16xf32> to vector<16xf32>
    %307 = vector.shape_cast %306 : vector<16xf32> to vector<16x1xf32>
    %308 = tpu.reciprocal %307 {approx = true} : vector<16x1xf32> -> vector<16x1xf32>
    %309 = vector.broadcast %308 : vector<16x1xf32> to vector<16x16xf32>
    %310 = arith.mulf %305, %309 : vector<16x16xf32>
    %cst_139 = arith.constant dense<0.000000e+00> : vector<16x32xf32>
    %311 = tpu.matmul %310, %293, %cst_139 {dimension_numbers = #tpu.dot_dimension_numbers<[1], [0], [0], [1], [0, 0, 1, 1], [], []>} : vector<16x16xf32>, vector<16x32xf32>, vector<16x32xf32> -> vector<16x32xf32>
    %312 = vector.broadcast %297 : vector<1x32xf32> to vector<16x32xf32>
    %313 = arith.addf %311, %312 : vector<16x32xf32>
    %cst_140 = arith.constant 0.000000e+00 : f32
    %314 = vector.broadcast %cst_140 : f32 to vector<16x32xf32>
    %315 = arith.maximumf %313, %314 : vector<16x32xf32>
    %316 = arith.mulf %315, %315 : vector<16x32xf32>
    %cst_141 = arith.constant dense<0.000000e+00> : vector<16xf32>
    %317 = vector.multi_reduction <add>, %316, %cst_141 [1] : vector<16x32xf32> to vector<16xf32>
    %318 = vector.shape_cast %317 : vector<16xf32> to vector<16x1xf32>
    %cst_142 = arith.constant 1.000000e-24 : f32
    %319 = vector.broadcast %cst_142 : f32 to vector<16x1xf32>
    %320 = arith.maximumf %318, %319 : vector<16x1xf32>
    %321 = math.rsqrt %320 : vector<16x1xf32>
    %322 = vector.broadcast %321 : vector<16x1xf32> to vector<16x32xf32>
    %323 = arith.mulf %315, %322 : vector<16x32xf32>
    %324 = vector.extract_strided_slice %259 {offsets = [0, 64], sizes = [16, 32], strides = [1, 1]} : vector<16x198xf32> to vector<16x32xf32>
    %325 = vector.extract_strided_slice %259 {offsets = [0, 194], sizes = [16, 1], strides = [1, 1]} : vector<16x198xf32> to vector<16x1xf32>
    %326 = vector.extract_strided_slice %261 {offsets = [2, 0], sizes = [1, 16], strides = [1, 1]} : vector<6x16xf32> to vector<1x16xf32>
    %c2_143 = arith.constant 2 : index
    %c0_144 = arith.constant 0 : index
    %c0_145 = arith.constant 0 : index
    %327 = vector.load %arg5[%c2_143, %c0_144, %c0_145] : memref<7x1x32xf32, #tpu.memory_space<vmem>>, vector<1x1x32xf32>
    %328 = vector.shape_cast %327 : vector<1x1x32xf32> to vector<1x32xf32>
    %329 = vector.broadcast %325 : vector<16x1xf32> to vector<16x16xf32>
    %330 = vector.broadcast %326 : vector<1x16xf32> to vector<16x16xf32>
    %331 = arith.addf %329, %330 : vector<16x16xf32>
    %cst_146 = arith.constant 2.000000e-01 : f32
    %332 = vector.broadcast %cst_146 : f32 to vector<16x16xf32>
    %333 = arith.mulf %332, %331 : vector<16x16xf32>
    %334 = arith.maximumf %331, %333 : vector<16x16xf32>
    %335 = arith.addf %334, %0 : vector<16x16xf32>
    %336 = math.exp %335 : vector<16x16xf32>
    %cst_147 = arith.constant dense<0.000000e+00> : vector<16xf32>
    %337 = vector.multi_reduction <add>, %336, %cst_147 [1] : vector<16x16xf32> to vector<16xf32>
    %338 = vector.shape_cast %337 : vector<16xf32> to vector<16x1xf32>
    %339 = tpu.reciprocal %338 {approx = true} : vector<16x1xf32> -> vector<16x1xf32>
    %340 = vector.broadcast %339 : vector<16x1xf32> to vector<16x16xf32>
    %341 = arith.mulf %336, %340 : vector<16x16xf32>
    %cst_148 = arith.constant dense<0.000000e+00> : vector<16x32xf32>
    %342 = tpu.matmul %341, %324, %cst_148 {dimension_numbers = #tpu.dot_dimension_numbers<[1], [0], [0], [1], [0, 0, 1, 1], [], []>} : vector<16x16xf32>, vector<16x32xf32>, vector<16x32xf32> -> vector<16x32xf32>
    %343 = vector.broadcast %328 : vector<1x32xf32> to vector<16x32xf32>
    %344 = arith.addf %342, %343 : vector<16x32xf32>
    %cst_149 = arith.constant 0.000000e+00 : f32
    %345 = vector.broadcast %cst_149 : f32 to vector<16x32xf32>
    %346 = arith.maximumf %344, %345 : vector<16x32xf32>
    %347 = arith.mulf %346, %346 : vector<16x32xf32>
    %cst_150 = arith.constant dense<0.000000e+00> : vector<16xf32>
    %348 = vector.multi_reduction <add>, %347, %cst_150 [1] : vector<16x32xf32> to vector<16xf32>
    %349 = vector.shape_cast %348 : vector<16xf32> to vector<16x1xf32>
    %cst_151 = arith.constant 1.000000e-24 : f32
    %350 = vector.broadcast %cst_151 : f32 to vector<16x1xf32>
    %351 = arith.maximumf %349, %350 : vector<16x1xf32>
    %352 = math.rsqrt %351 : vector<16x1xf32>
    %353 = vector.broadcast %352 : vector<16x1xf32> to vector<16x32xf32>
    %354 = arith.mulf %346, %353 : vector<16x32xf32>
    %355 = vector.extract_strided_slice %259 {offsets = [0, 96], sizes = [16, 32], strides = [1, 1]} : vector<16x198xf32> to vector<16x32xf32>
    %356 = vector.extract_strided_slice %259 {offsets = [0, 195], sizes = [16, 1], strides = [1, 1]} : vector<16x198xf32> to vector<16x1xf32>
    %357 = vector.extract_strided_slice %261 {offsets = [3, 0], sizes = [1, 16], strides = [1, 1]} : vector<6x16xf32> to vector<1x16xf32>
    %c3_152 = arith.constant 3 : index
    %c0_153 = arith.constant 0 : index
    %c0_154 = arith.constant 0 : index
    %358 = vector.load %arg5[%c3_152, %c0_153, %c0_154] : memref<7x1x32xf32, #tpu.memory_space<vmem>>, vector<1x1x32xf32>
    %359 = vector.shape_cast %358 : vector<1x1x32xf32> to vector<1x32xf32>
    %360 = vector.broadcast %356 : vector<16x1xf32> to vector<16x16xf32>
    %361 = vector.broadcast %357 : vector<1x16xf32> to vector<16x16xf32>
    %362 = arith.addf %360, %361 : vector<16x16xf32>
    %cst_155 = arith.constant 2.000000e-01 : f32
    %363 = vector.broadcast %cst_155 : f32 to vector<16x16xf32>
    %364 = arith.mulf %363, %362 : vector<16x16xf32>
    %365 = arith.maximumf %362, %364 : vector<16x16xf32>
    %366 = arith.addf %365, %0 : vector<16x16xf32>
    %367 = math.exp %366 : vector<16x16xf32>
    %cst_156 = arith.constant dense<0.000000e+00> : vector<16xf32>
    %368 = vector.multi_reduction <add>, %367, %cst_156 [1] : vector<16x16xf32> to vector<16xf32>
    %369 = vector.shape_cast %368 : vector<16xf32> to vector<16x1xf32>
    %370 = tpu.reciprocal %369 {approx = true} : vector<16x1xf32> -> vector<16x1xf32>
    %371 = vector.broadcast %370 : vector<16x1xf32> to vector<16x16xf32>
    %372 = arith.mulf %367, %371 : vector<16x16xf32>
    %cst_157 = arith.constant dense<0.000000e+00> : vector<16x32xf32>
    %373 = tpu.matmul %372, %355, %cst_157 {dimension_numbers = #tpu.dot_dimension_numbers<[1], [0], [0], [1], [0, 0, 1, 1], [], []>} : vector<16x16xf32>, vector<16x32xf32>, vector<16x32xf32> -> vector<16x32xf32>
    %374 = vector.broadcast %359 : vector<1x32xf32> to vector<16x32xf32>
    %375 = arith.addf %373, %374 : vector<16x32xf32>
    %cst_158 = arith.constant 0.000000e+00 : f32
    %376 = vector.broadcast %cst_158 : f32 to vector<16x32xf32>
    %377 = arith.maximumf %375, %376 : vector<16x32xf32>
    %378 = arith.mulf %377, %377 : vector<16x32xf32>
    %cst_159 = arith.constant dense<0.000000e+00> : vector<16xf32>
    %379 = vector.multi_reduction <add>, %378, %cst_159 [1] : vector<16x32xf32> to vector<16xf32>
    %380 = vector.shape_cast %379 : vector<16xf32> to vector<16x1xf32>
    %cst_160 = arith.constant 1.000000e-24 : f32
    %381 = vector.broadcast %cst_160 : f32 to vector<16x1xf32>
    %382 = arith.maximumf %380, %381 : vector<16x1xf32>
    %383 = math.rsqrt %382 : vector<16x1xf32>
    %384 = vector.broadcast %383 : vector<16x1xf32> to vector<16x32xf32>
    %385 = arith.mulf %377, %384 : vector<16x32xf32>
    %386 = vector.extract_strided_slice %259 {offsets = [0, 128], sizes = [16, 32], strides = [1, 1]} : vector<16x198xf32> to vector<16x32xf32>
    %387 = vector.extract_strided_slice %259 {offsets = [0, 196], sizes = [16, 1], strides = [1, 1]} : vector<16x198xf32> to vector<16x1xf32>
    %388 = vector.extract_strided_slice %261 {offsets = [4, 0], sizes = [1, 16], strides = [1, 1]} : vector<6x16xf32> to vector<1x16xf32>
    %c4_161 = arith.constant 4 : index
    %c0_162 = arith.constant 0 : index
    %c0_163 = arith.constant 0 : index
    %389 = vector.load %arg5[%c4_161, %c0_162, %c0_163] : memref<7x1x32xf32, #tpu.memory_space<vmem>>, vector<1x1x32xf32>
    %390 = vector.shape_cast %389 : vector<1x1x32xf32> to vector<1x32xf32>
    %391 = vector.broadcast %387 : vector<16x1xf32> to vector<16x16xf32>
    %392 = vector.broadcast %388 : vector<1x16xf32> to vector<16x16xf32>
    %393 = arith.addf %391, %392 : vector<16x16xf32>
    %cst_164 = arith.constant 2.000000e-01 : f32
    %394 = vector.broadcast %cst_164 : f32 to vector<16x16xf32>
    %395 = arith.mulf %394, %393 : vector<16x16xf32>
    %396 = arith.maximumf %393, %395 : vector<16x16xf32>
    %397 = arith.addf %396, %0 : vector<16x16xf32>
    %398 = math.exp %397 : vector<16x16xf32>
    %cst_165 = arith.constant dense<0.000000e+00> : vector<16xf32>
    %399 = vector.multi_reduction <add>, %398, %cst_165 [1] : vector<16x16xf32> to vector<16xf32>
    %400 = vector.shape_cast %399 : vector<16xf32> to vector<16x1xf32>
    %401 = tpu.reciprocal %400 {approx = true} : vector<16x1xf32> -> vector<16x1xf32>
    %402 = vector.broadcast %401 : vector<16x1xf32> to vector<16x16xf32>
    %403 = arith.mulf %398, %402 : vector<16x16xf32>
    %cst_166 = arith.constant dense<0.000000e+00> : vector<16x32xf32>
    %404 = tpu.matmul %403, %386, %cst_166 {dimension_numbers = #tpu.dot_dimension_numbers<[1], [0], [0], [1], [0, 0, 1, 1], [], []>} : vector<16x16xf32>, vector<16x32xf32>, vector<16x32xf32> -> vector<16x32xf32>
    %405 = vector.broadcast %390 : vector<1x32xf32> to vector<16x32xf32>
    %406 = arith.addf %404, %405 : vector<16x32xf32>
    %cst_167 = arith.constant 0.000000e+00 : f32
    %407 = vector.broadcast %cst_167 : f32 to vector<16x32xf32>
    %408 = arith.maximumf %406, %407 : vector<16x32xf32>
    %409 = arith.mulf %408, %408 : vector<16x32xf32>
    %cst_168 = arith.constant dense<0.000000e+00> : vector<16xf32>
    %410 = vector.multi_reduction <add>, %409, %cst_168 [1] : vector<16x32xf32> to vector<16xf32>
    %411 = vector.shape_cast %410 : vector<16xf32> to vector<16x1xf32>
    %cst_169 = arith.constant 1.000000e-24 : f32
    %412 = vector.broadcast %cst_169 : f32 to vector<16x1xf32>
    %413 = arith.maximumf %411, %412 : vector<16x1xf32>
    %414 = math.rsqrt %413 : vector<16x1xf32>
    %415 = vector.broadcast %414 : vector<16x1xf32> to vector<16x32xf32>
    %416 = arith.mulf %408, %415 : vector<16x32xf32>
    %417 = vector.extract_strided_slice %259 {offsets = [0, 160], sizes = [16, 32], strides = [1, 1]} : vector<16x198xf32> to vector<16x32xf32>
    %418 = vector.extract_strided_slice %259 {offsets = [0, 197], sizes = [16, 1], strides = [1, 1]} : vector<16x198xf32> to vector<16x1xf32>
    %419 = vector.extract_strided_slice %261 {offsets = [5, 0], sizes = [1, 16], strides = [1, 1]} : vector<6x16xf32> to vector<1x16xf32>
    %c5_170 = arith.constant 5 : index
    %c0_171 = arith.constant 0 : index
    %c0_172 = arith.constant 0 : index
    %420 = vector.load %arg5[%c5_170, %c0_171, %c0_172] : memref<7x1x32xf32, #tpu.memory_space<vmem>>, vector<1x1x32xf32>
    %421 = vector.shape_cast %420 : vector<1x1x32xf32> to vector<1x32xf32>
    %422 = vector.broadcast %418 : vector<16x1xf32> to vector<16x16xf32>
    %423 = vector.broadcast %419 : vector<1x16xf32> to vector<16x16xf32>
    %424 = arith.addf %422, %423 : vector<16x16xf32>
    %cst_173 = arith.constant 2.000000e-01 : f32
    %425 = vector.broadcast %cst_173 : f32 to vector<16x16xf32>
    %426 = arith.mulf %425, %424 : vector<16x16xf32>
    %427 = arith.maximumf %424, %426 : vector<16x16xf32>
    %428 = arith.addf %427, %0 : vector<16x16xf32>
    %429 = math.exp %428 : vector<16x16xf32>
    %cst_174 = arith.constant dense<0.000000e+00> : vector<16xf32>
    %430 = vector.multi_reduction <add>, %429, %cst_174 [1] : vector<16x16xf32> to vector<16xf32>
    %431 = vector.shape_cast %430 : vector<16xf32> to vector<16x1xf32>
    %432 = tpu.reciprocal %431 {approx = true} : vector<16x1xf32> -> vector<16x1xf32>
    %433 = vector.broadcast %432 : vector<16x1xf32> to vector<16x16xf32>
    %434 = arith.mulf %429, %433 : vector<16x16xf32>
    %cst_175 = arith.constant dense<0.000000e+00> : vector<16x32xf32>
    %435 = tpu.matmul %434, %417, %cst_175 {dimension_numbers = #tpu.dot_dimension_numbers<[1], [0], [0], [1], [0, 0, 1, 1], [], []>} : vector<16x16xf32>, vector<16x32xf32>, vector<16x32xf32> -> vector<16x32xf32>
    %436 = vector.broadcast %421 : vector<1x32xf32> to vector<16x32xf32>
    %437 = arith.addf %435, %436 : vector<16x32xf32>
    %cst_176 = arith.constant 0.000000e+00 : f32
    %438 = vector.broadcast %cst_176 : f32 to vector<16x32xf32>
    %439 = arith.maximumf %437, %438 : vector<16x32xf32>
    %440 = arith.mulf %439, %439 : vector<16x32xf32>
    %cst_177 = arith.constant dense<0.000000e+00> : vector<16xf32>
    %441 = vector.multi_reduction <add>, %440, %cst_177 [1] : vector<16x32xf32> to vector<16xf32>
    %442 = vector.shape_cast %441 : vector<16xf32> to vector<16x1xf32>
    %cst_178 = arith.constant 1.000000e-24 : f32
    %443 = vector.broadcast %cst_178 : f32 to vector<16x1xf32>
    %444 = arith.maximumf %442, %443 : vector<16x1xf32>
    %445 = math.rsqrt %444 : vector<16x1xf32>
    %446 = vector.broadcast %445 : vector<16x1xf32> to vector<16x32xf32>
    %447 = arith.mulf %439, %446 : vector<16x32xf32>
    %448 = tpu.concatenate %229, %292, %323, %354, %385, %416, %447, %257 in 0 : vector<16x32xf32>, vector<16x32xf32>, vector<16x32xf32>, vector<16x32xf32>, vector<16x32xf32>, vector<16x32xf32>, vector<16x32xf32>, vector<16x32xf32> -> vector<128x32xf32>
    %c0_179 = arith.constant 0 : index
    %c0_180 = arith.constant 0 : index
    %449 = vector.load %arg8[%c0_179, %c0_180] : memref<32x32xf32, #tpu.memory_space<vmem>>, vector<32x32xf32>
    %cst_181 = arith.constant dense<0.000000e+00> : vector<128x32xf32>
    %450 = tpu.matmul %448, %449, %cst_181 {dimension_numbers = #tpu.dot_dimension_numbers<[1], [0], [0], [1], [0, 0, 1, 1], [], []>} : vector<128x32xf32>, vector<32x32xf32>, vector<128x32xf32> -> vector<128x32xf32>
    %c0_182 = arith.constant 0 : index
    %c0_183 = arith.constant 0 : index
    %451 = vector.load %arg9[%c0_182, %c0_183] : memref<1x32xf32, #tpu.memory_space<vmem>>, vector<1x32xf32>
    %452 = vector.broadcast %451 : vector<1x32xf32> to vector<128x32xf32>
    %453 = arith.addf %450, %452 : vector<128x32xf32>
    %cst_184 = arith.constant 0.000000e+00 : f32
    %454 = vector.broadcast %cst_184 : f32 to vector<128x32xf32>
    %455 = arith.maximumf %453, %454 : vector<128x32xf32>
    %456 = vector.extract_strided_slice %455 {offsets = [0, 0], sizes = [16, 32], strides = [1, 1]} : vector<128x32xf32> to vector<16x32xf32>
    %457 = vector.extract_strided_slice %455 {offsets = [16, 0], sizes = [16, 32], strides = [1, 1]} : vector<128x32xf32> to vector<16x32xf32>
    %458 = arith.addf %456, %457 : vector<16x32xf32>
    %459 = vector.extract_strided_slice %455 {offsets = [32, 0], sizes = [16, 32], strides = [1, 1]} : vector<128x32xf32> to vector<16x32xf32>
    %460 = arith.addf %458, %459 : vector<16x32xf32>
    %461 = vector.extract_strided_slice %455 {offsets = [48, 0], sizes = [16, 32], strides = [1, 1]} : vector<128x32xf32> to vector<16x32xf32>
    %462 = arith.addf %460, %461 : vector<16x32xf32>
    %463 = vector.extract_strided_slice %455 {offsets = [64, 0], sizes = [16, 32], strides = [1, 1]} : vector<128x32xf32> to vector<16x32xf32>
    %464 = arith.addf %462, %463 : vector<16x32xf32>
    %465 = vector.extract_strided_slice %455 {offsets = [80, 0], sizes = [16, 32], strides = [1, 1]} : vector<128x32xf32> to vector<16x32xf32>
    %466 = arith.addf %464, %465 : vector<16x32xf32>
    %467 = vector.extract_strided_slice %455 {offsets = [96, 0], sizes = [16, 32], strides = [1, 1]} : vector<128x32xf32> to vector<16x32xf32>
    %468 = arith.addf %466, %467 : vector<16x32xf32>
    %469 = vector.extract_strided_slice %455 {offsets = [112, 0], sizes = [16, 32], strides = [1, 1]} : vector<128x32xf32> to vector<16x32xf32>
    %470 = arith.addf %468, %469 : vector<16x32xf32>
    %c0_185 = arith.constant 0 : index
    %c0_186 = arith.constant 0 : index
    %471 = vector.load %arg10[%c0_185, %c0_186] : memref<32x1xf32, #tpu.memory_space<vmem>>, vector<32x1xf32>
    %cst_187 = arith.constant dense<0.000000e+00> : vector<16x1xf32>
    %472 = tpu.matmul %470, %471, %cst_187 {dimension_numbers = #tpu.dot_dimension_numbers<[1], [0], [0], [1], [0, 0, 1, 1], [], []>} : vector<16x32xf32>, vector<32x1xf32>, vector<16x1xf32> -> vector<16x1xf32>
    %c0_188 = arith.constant 0 : index
    %c0_189 = arith.constant 0 : index
    %473 = vector.load %arg11[%c0_188, %c0_189] : memref<1x1xf32, #tpu.memory_space<vmem>>, vector<1x1xf32>
    %cst_190 = arith.constant 8.000000e+00 : f32
    %474 = vector.broadcast %cst_190 : f32 to vector<1x1xf32>
    %475 = arith.mulf %474, %473 : vector<1x1xf32>
    %476 = vector.broadcast %475 : vector<1x1xf32> to vector<16x1xf32>
    %477 = arith.addf %472, %476 : vector<16x1xf32>
    %c0_191 = arith.constant 0 : index
    %c0_192 = arith.constant 0 : index
    %478 = vector.load %arg12[%c0_191, %c0_192] : memref<16x1xf32, #tpu.memory_space<vmem>>, vector<16x1xf32>
    tpu.vector_store %arg12[%c0_191, %c0_192], %477 {strides = array<i32>} : memref<16x1xf32, #tpu.memory_space<vmem>>, vector<16x1xf32>,
    return
  }
}

</mosaic_0001>

<bundles_post_ra>
// kernel: gat_close_forward.1
= control target key start
LH: loop header
LB: loop body
LE: loop exit
PB: predicated region body
PF: predicated region fallthrough
CT: control target
= control target key end

     0   :  { %vm49_vm0 = vcmask 130048   ;;  %vm135_vm1 = vcmask 261120   ;;  %v4294_v16 = vmov 0.0   ;;  %vm4295_vm2 = vmmov 0   ;;  %s4303_s30 = smov 32   ;;  %s5001_s2 = inlined_call_operand.vmem [shape: f32[16,32], index: 2, kind: input, shape index: {}]   ;;  %s5002_s0 = inlined_call_operand.vmem [shape: f32[16,16], index: 0, kind: input, shape index: {}]   ;;  %s5003_s3 = inlined_call_operand.vmem [shape: f32[7,32,33], index: 3, kind: input, shape index: {}]   ;;  %s5004_s4 = inlined_call_operand.vmem [shape: f32[7,1,32], index: 4, kind: input, shape index: {}]   ;;  %s5005_s1 = inlined_call_operand.vmem [shape: f32[16,16], index: 1, kind: input, shape index: {}]   ;;  %s5006_s5 = inlined_call_operand.vmem [shape: f32[7,1,32], index: 5, kind: input, shape index: {}]   ;;  %s5007_s6 = inlined_call_operand.vmem [shape: f32[32,198], index: 6, kind: input, shape index: {}]   ;;  %s5008_s7 = inlined_call_operand.vmem [shape: f32[6,32], index: 7, kind: input, shape index: {}]   ;;  %s5009_s8 = inlined_call_operand.vmem [shape: f32[32,32], index: 8, kind: input, shape index: {}]   ;;  %s5010_s10 = inlined_call_operand.vmem [shape: f32[32,1], index: 10, kind: input, shape index: {}]   ;;  %s5011_s11 = inlined_call_operand.<no memory space> [shape: f32[1,1], index: 11, kind: input, shape index: {}]   ;;  %s5012_s9 = inlined_call_operand.vmem [shape: f32[1,32], index: 9, kind: input, shape index: {}]   ;;  %s5013_s12 = inlined_call_operand.vmem [shape: f32[16,1], index: 12, kind: output, shape index: {}]  }
   0x1   :  { %v48_v0 = vld [vmem:[%s5001_s2 + $0x8] sm:$0xff]  ;;  %v47_v1 = vld [vmem:[%s5001_s2] sm:$0xff]  ;;  %v151_v12 = vld [vmem:[%s5003_s3 + $0x18] sm:$0xff]  ;;  %v4296_v26 = vmov 32   ;;  %v318_v31 = vlaneseq  ;;  %vm3539_vm3 = vcmask 7168  }
   0x2   :  { %v45_v2 = vld [vmem:[%s5002_s0] sm:$0xff]  ;;  %3824 = vmatprep.subr.mxu0 %v48_v0  ;;  %v46_v3 = vld [vmem:[%s5002_s0 + $0x8] sm:$0xff]  ;;  %v150_v13 = vld [vmem:[%s5003_s3 + $0x10] sm:$0xff]  ;;  %3831 = vmatprep.subr.mxu1 %v151_v12 }
   0x3   :  { %3828 = vmatprep.mubr.msk.f32.mxu0 %vm49_vm0, %v45_v2  ;;  %3825 = vmatpush3.msra.mxu0 %v48_v0  ;;  %v149_v14 = vld [vmem:[%s5003_s3 + $0x8] sm:$0xff]  ;;  %v148_v15 = vld [vmem:[%s5003_s3] sm:$0xff]  ;;  %v4412_v32 = vshrl.u32 %v318_v31, 7 }
   0x4   :  { %3826 = vmatprep.subr.mxu0 %v47_v1  ;;  %3832 = vmatpush3.msra.mxu1 %v151_v12  ;;  %v233_v25 = vld [vmem:[%s5004_s4] sm:$0x1]  ;;  %v4427_v44 = vld [vmem:[%s5005_s1 + $0x8] sm:$0xff] }
   0x5   :  { %3827 = vmatpush3.msra.mxu0 %v47_v1  ;;  %3833 = vmatprep.subr.mxu1 %v150_v13  ;;  %v4415_v33 = vsub.s32 0, %v4412_v32  ;;  %v4421_v38 = vld [vmem:[%s5005_s1] sm:$0xff] }
   0x6   :  { %3829 = vmatmul.mubr.msk.f32.vlgmr.msra.gmra.mxu0 %vm49_vm0, %v46_v3  ;;  %3834 = vmatpush3.msra.mxu1 %v150_v13  ;;  %v3553_v59 = vld [vmem:[%s5006_s5] ss:$0 sm:$0xff] }
   0x7   :  { %3835 = vmatprep.subr.mxu1 %v149_v14  ;;  %3842 = vmatprep.subr.mxu0 %v4294_v16 }
   0x8   :  { %3836 = vmatpush3.msra.mxu1 %v149_v14  ;;  %3846 = vmatprep.mubr.msk.f32.mxu0 %vm4295_vm2, %v4294_v16 }
   0x9   :  { %3837 = vmatprep.subr.mxu1 %v148_v15  ;;  %4118 = vset.pattern.permute.xlu1 %v4296_v26 }
   0xa   :  { %3838 = vmatpush3.msra.mxu1 %v148_v15  ;;  %4119 = vset.pattern.permute.xlu0 %v4296_v26 }
  0xc6   :  { %v3830_v4 = vpop.f32.mrf.mxu0 }
  0xc7   :  { %v132_v6 = vmax.f32 %v3830_v4, 0.0 }
  0xc8   :  { %v122_v5 = vpop.f32.mrf.mxu0 }
  0xc9   :  { %v131_v7 = vmax.f32 %v122_v5, 0.0  ;;  %v134_v10 = vmul.f32 %v132_v6, %v132_v6 }
  0xcb   :  { %v133_v8 = vmul.f32 %v131_v7, %v131_v7  ;;  %v139_v11 = vsel %vm135_vm1, %v134_v10, 0.0 }
  0xcd   :  { %v136_v9 = vsel %vm135_vm1, %v133_v8, 0.0  ;;  %v3557_v8 = vld [vmem:[%s5003_s3 + $0x28] sm:$0xff] }
  0xce   :  { %137 = vadd.xlane.f32.xlu0 %v136_v9  ;;  %v3556_v9 = vld [vmem:[%s5003_s3 + $0x20] sm:$0xff] }
  0xd2   :  { %140 = vadd.xlane.f32.xlu0 %v139_v11 }
 0x157   :  { %v138_v17 = vpop.xlane.xlu0 %137 }
 0x158   :  { %v142_v18 = vmax.f32 %v138_v17, 1e-24 }
 0x15a   :  { %4131 = vrsqrt.f32 %v142_v18 }
 0x15b   :  { %v141_v19 = vpop.xlane.xlu0 %140 }
 0x15c   :  { %v143_v20 = vmax.f32 %v141_v19, 1e-24  ;;  %v3562_v19 = vld [vmem:[%s5004_s4 + $0x1] sm:$0x1] }
 0x15e   :  { %4133 = vrsqrt.f32 %v143_v20 }
 0x167   :  { %v4132_v21 = vpop.eup %4131 }
 0x168   :  { %v146_v22 = vmul.f32 %v4132_v21, %v131_v7  ;;  %v3558_v7 = vld [vmem:[%s5003_s3 + $0x30] sm:$0xff] }
 0x16a   :  { %3839 = vmatprep.mubr.msk.f32.mxu1 %vm135_vm1, %v146_v22 }
 0x16b   :  { %v4134_v23 = vpop.eup %4133 }
 0x16c   :  { %v147_v24 = vmul.f32 %v4134_v23, %v132_v6  ;;  %v3559_v6 = vld [vmem:[%s5003_s3 + $0x38] sm:$0xff] }
 0x16e   :  { %3840 = vmatmul.mubr.msk.f32.vlgmr.msra.gmra.mxu1 %vm135_vm1, %v147_v24  ;;  %3843 = vmatpush3.xpose.msk.msra.mxu0 %vm135_vm1, %v147_v24 }
 0x16f   :  { %3844 = vmatprep.subr.mxu0 %v4294_v16 }
 0x172   :  { %3845 = vmatpush3.xpose.msk.msra.mxu0 %vm135_vm1, %v146_v22 }
 0x173   :  { %3856 = vmatprep.subr.mxu0 %v3559_v6 }
 0x175   :  { %3847 = vmatmul.mubr.msk.f32.vlgmr.msra.gmra.mxu0 %vm135_vm1, %v233_v25 }
 0x176   :  { %3857 = vmatpush3.msra.mxu0 %v3559_v6 }
 0x177   :  { %3858 = vmatprep.subr.mxu0 %v3558_v7 }
 0x178   :  { %3859 = vmatpush3.msra.mxu0 %v3558_v7 }
 0x179   :  { %3860 = vmatprep.subr.mxu0 %v3557_v8 }
 0x17a   :  { %3861 = vmatpush3.msra.mxu0 %v3557_v8 }
 0x17b   :  { %3862 = vmatprep.subr.mxu0 %v3556_v9 }
 0x17c   :  { %3863 = vmatpush3.msra.mxu0 %v3556_v9 }
 0x22e   :  { %v3841_v27 = vpop.f32.mrf.mxu1 }
 0x22f   :  { %3849 = vmatprep.subr.mxu1 %v3841_v27 }
 0x230   :  { %v224_v28 = vpop.f32.mrf.mxu1  ;;  %3850 = vmatpush3.msra.mxu1 %v3841_v27 }
 0x231   :  { %310 = vperm.xlu1 %4118, %v224_v28   ;;  %3851 = vmatprep.subr.mxu1 %v224_v28 }
 0x232   :  { %3852 = vmatpush3.msra.mxu1 %v224_v28 }
 0x233   :  { %3867 = vmatprep.subr.mxu1 %v4294_v16 }
 0x235   :  { %315 = vperm.xlu1 %4118, %v3841_v27   ;;  %v303_v29 = vpop.f32.mrf.mxu0 }
 0x236   :  { %v321_v34 = vrot.slane %v303_v29, %v4415_v33 }
 0x237   :  { %v3848_v30 = vpop.f32.mrf.mxu0 }
 0x2ac   :  { %v311_v35 = vpop.permute.xlu1 %310 }
 0x2ad   :  { %v322_v36 = vadd.f32 %v321_v34, %v311_v35 }
 0x2af   :  { %v324_v37 = vmul.f32 0.2, %v322_v36 }
 0x2b0   :  { %v316_v39 = vpop.permute.xlu1 %315 }
 0x2b1   :  { %v326_v40 = vmax.f32 %v322_v36, %v324_v37  ;;  %v323_v41 = vadd.f32 %v321_v34, %v316_v39 }
 0x2b3   :  { %v328_v42 = vadd.f32 %v326_v40, %v4421_v38  ;;  %v325_v43 = vmul.f32 0.2, %v323_v41 }
 0x2b5   :  { %v330_v45 = vmul.f32 1.442695, %v328_v42  ;;  %v327_v46 = vmax.f32 %v323_v41, %v325_v43 }
 0x2b7   :  { %4135 = vpow2.f32 %v330_v45  ;;  %v329_v47 = vadd.f32 %v327_v46, %v4427_v44 }
 0x2b9   :  { %v332_v48 = vmul.f32 1.442695, %v329_v47 }
 0x2bb   :  { %4137 = vpow2.f32 %v332_v48 }
 0x2c4   :  { %v4136_v49 = vpop.eup %4135 }
 0x2c5   :  { %v334_v50 = vsel %vm49_vm0, %v4136_v49, 0.0 }
 0x2c6   :  { %335 = vadd.xlane.f32.xlu0 %v334_v50 }
 0x2c8   :  { %v4138_v51 = vpop.eup %4137 }
 0x2c9   :  { %v337_v52 = vsel %vm49_vm0, %v4138_v51, 0.0 }
 0x2ca   :  { %338 = vadd.xlane.f32.xlu1 %v337_v52 }
 0x34f   :  { %v336_v53 = vpop.xlane.xlu0 %335 }
 0x350   :  { %4139 = vrcp.f32 %v336_v53 }
 0x353   :  { %v339_v54 = vpop.xlane.xlu1 %338 }
 0x354   :  { %4141 = vrcp.f32 %v339_v54 }
 0x35d   :  { %v4140_v55 = vpop.eup %4139 }
 0x35e   :  { %v342_v56 = vmul.f32 %v4140_v55, %v4136_v49 }
 0x360   :  { %3853 = vmatprep.mubr.msk.f32.mxu1 %vm49_vm0, %v342_v56 }
 0x361   :  { %v4142_v57 = vpop.eup %4141 }
 0x362   :  { %v343_v58 = vmul.f32 %v4142_v57, %v4138_v51  ;;  %v3567_v51 = vld [vmem:[%s5006_s5 + $0x1] ss:$0 sm:$0xff] }
 0x364   :  { %3854 = vmatmul.mubr.msk.f32.vlgmr.msra.gmra.mxu1 %vm49_vm0, %v343_v58 }
 0x365   :  { %3871 = vmatprep.mubr.msk.f32.mxu1 %vm4295_vm2, %v4294_v16 }
 0x424   :  { %v3855_v60 = vpop.f32.mrf.mxu1 }
 0x425   :  { %v428_v61 = vadd.f32 %v3855_v60, %v3553_v59 }
 0x426   :  { %v422_v62 = vpop.f32.mrf.mxu1 }
 0x427   :  { %v423_v63 = vadd.f32 %v3553_v59, %v422_v62  ;;  %v432_v0 = vmax.f32 %v428_v61, 0.0  ;;  %v3573_v62 = vld [vmem:[%s5003_s3 + $0x58] sm:$0xff] }
 0x429   :  { %v431_v1 = vmax.f32 %v423_v63, 0.0  ;;  %v434_v4 = vmul.f32 %v432_v0, %v432_v0  ;;  %v3572_v63 = vld [vmem:[%s5003_s3 + $0x50] sm:$0xff] }
 0x42b   :  { %v433_v2 = vmul.f32 %v431_v1, %v431_v1  ;;  %v438_v5 = vsel %vm135_vm1, %v434_v4, 0.0 }
 0x42d   :  { %v435_v3 = vsel %vm135_vm1, %v433_v2, 0.0 }
 0x42e   :  { %436 = vadd.xlane.f32.xlu0 %v435_v3 }
 0x432   :  { %439 = vadd.xlane.f32.xlu0 %v438_v5 }
 0x4b7   :  { %v437_v10 = vpop.xlane.xlu0 %436 }
 0x4b8   :  { %v441_v11 = vmax.f32 %v437_v10, 1e-24  ;;  %v3576_v10 = vld [vmem:[%s5004_s4 + $0x2] sm:$0x1] }
 0x4ba   :  { %4143 = vrsqrt.f32 %v441_v11 }
 0x4bb   :  { %v440_v12 = vpop.xlane.xlu0 %439 }
 0x4bc   :  { %v442_v13 = vmax.f32 %v440_v12, 1e-24 }
 0x4be   :  { %4145 = vrsqrt.f32 %v442_v13 }
 0x4c7   :  { %v4144_v14 = vpop.eup %4143 }
 0x4c8   :  { %v445_v15 = vmul.f32 %v4144_v14, %v431_v1  ;;  %v3570_v1 = vld [vmem:[%s5003_s3 + $0x40] sm:$0xff] }
 0x4ca   :  { %3864 = vmatprep.mubr.msk.f32.mxu0 %vm135_vm1, %v445_v15 }
 0x4cb   :  { %v4146_v17 = vpop.eup %4145 }
 0x4cc   :  { %v446_v18 = vmul.f32 %v4146_v17, %v432_v0  ;;  %v3571_v0 = vld [vmem:[%s5003_s3 + $0x48] sm:$0xff] }
 0x4ce   :  { %3865 = vmatmul.mubr.msk.f32.vlgmr.msra.gmra.mxu0 %vm135_vm1, %v446_v18  ;;  %3868 = vmatpush3.xpose.msk.msra.mxu1 %vm135_vm1, %v446_v18 }
 0x4cf   :  { %3869 = vmatprep.subr.mxu1 %v4294_v16 }
 0x4d2   :  { %3870 = vmatpush3.xpose.msk.msra.mxu1 %vm135_vm1, %v445_v15 }
 0x4d3   :  { %3881 = vmatprep.subr.mxu1 %v3573_v62 }
 0x4d5   :  { %3872 = vmatmul.mubr.msk.f32.vlgmr.msra.gmra.mxu1 %vm135_vm1, %v3562_v19 }
 0x4d6   :  { %3882 = vmatpush3.msra.mxu1 %v3573_v62 }
 0x4d7   :  { %3883 = vmatprep.subr.mxu1 %v3572_v63 }
 0x4d8   :  { %3884 = vmatpush3.msra.mxu1 %v3572_v63 }
 0x4d9   :  { %3885 = vmatprep.subr.mxu1 %v3571_v0 }
 0x4da   :  { %3886 = vmatpush3.msra.mxu1 %v3571_v0 }
 0x4db   :  { %3887 = vmatprep.subr.mxu1 %v3570_v1 }
 0x4dc   :  { %3888 = vmatpush3.msra.mxu1 %v3570_v1 }
 0x58e   :  { %v3866_v20 = vpop.f32.mrf.mxu0 }
 0x58f   :  { %617 = vperm.xlu1 %4118, %v3866_v20   ;;  %3874 = vmatprep.subr.mxu0 %v3866_v20 }
 0x590   :  { %v524_v21 = vpop.f32.mrf.mxu0  ;;  %3875 = vmatpush3.msra.mxu0 %v3866_v20 }
 0x591   :  { %612 = vperm.xlu0 %4119, %v524_v21   ;;  %3876 = vmatprep.subr.mxu0 %v524_v21 }
 0x592   :  { %3877 = vmatpush3.msra.mxu0 %v524_v21 }
 0x593   :  { %3892 = vmatprep.subr.mxu0 %v4294_v16 }
 0x595   :  { %v604_v22 = vpop.f32.mrf.mxu1 }
 0x596   :  { %v623_v24 = vrot.slane %v604_v22, %v4415_v33 }
 0x597   :  { %v3873_v23 = vpop.f32.mrf.mxu1 }
 0x60a   :  { %v618_v25 = vpop.permute.xlu1 %617 }
 0x60b   :  { %v625_v26 = vadd.f32 %v623_v24, %v618_v25 }
 0x60c   :  { %v613_v27 = vpop.permute.xlu0 %612 }
 0x60d   :  { %v627_v28 = vmul.f32 0.2, %v625_v26  ;;  %v624_v29 = vadd.f32 %v623_v24, %v613_v27 }
 0x60f   :  { %v629_v30 = vmax.f32 %v625_v26, %v627_v28  ;;  %v626_v31 = vmul.f32 0.2, %v624_v29 }
 0x611   :  { %v631_v34 = vadd.f32 %v629_v30, %v4427_v44  ;;  %v628_v35 = vmax.f32 %v624_v29, %v626_v31 }
 0x613   :  { %v634_v36 = vmul.f32 1.442695, %v631_v34  ;;  %v630_v37 = vadd.f32 %v628_v35, %v4421_v38 }
 0x615   :  { %4147 = vpow2.f32 %v634_v36  ;;  %v632_v39 = vmul.f32 1.442695, %v630_v37 }
 0x617   :  { %4149 = vpow2.f32 %v632_v39 }
 0x622   :  { %v4148_v40 = vpop.eup %4147 }
 0x623   :  { %v639_v41 = vsel %vm49_vm0, %v4148_v40, 0.0 }
 0x624   :  { %v4150_v42 = vpop.eup %4149  ;;  %640 = vadd.xlane.f32.xlu0 %v639_v41 }
 0x625   :  { %v636_v43 = vsel %vm49_vm0, %v4150_v42, 0.0 }
 0x626   :  { %637 = vadd.xlane.f32.xlu1 %v636_v43 }
 0x6ad   :  { %v641_v45 = vpop.xlane.xlu0 %640 }
 0x6ae   :  { %4151 = vrcp.f32 %v641_v45 }
 0x6af   :  { %v638_v46 = vpop.xlane.xlu1 %637 }
 0x6b0   :  { %4153 = vrcp.f32 %v638_v46 }
 0x6bb   :  { %v4152_v47 = vpop.eup %4151 }
 0x6bc   :  { %v645_v50 = vmul.f32 %v4152_v47, %v4148_v40 }
 0x6bd   :  { %v4154_v48 = vpop.eup %4153 }
 0x6be   :  { %v644_v49 = vmul.f32 %v4154_v48, %v4150_v42  ;;  %v3581_v42 = vld [vmem:[%s5006_s5 + $0x2] ss:$0 sm:$0xff] }
 0x6c0   :  { %3878 = vmatprep.mubr.msk.f32.mxu0 %vm49_vm0, %v644_v49 }
 0x6c1   :  { %3879 = vmatmul.mubr.msk.f32.vlgmr.msra.gmra.mxu0 %vm49_vm0, %v645_v50 }
 0x6c2   :  { %3896 = vmatprep.mubr.msk.f32.mxu0 %vm4295_vm2, %v4294_v16 }
 0x781   :  { %v3880_v52 = vpop.f32.mrf.mxu0 }
 0x782   :  { %v730_v53 = vadd.f32 %v3880_v52, %v3567_v51 }
 0x783   :  { %v724_v54 = vpop.f32.mrf.mxu0 }
 0x784   :  { %v734_v55 = vmax.f32 %v730_v53, 0.0  ;;  %v725_v56 = vadd.f32 %v3567_v51, %v724_v54  ;;  %v3587_v54 = vld [vmem:[%s5003_s3 + $0x78] sm:$0xff] }
 0x786   :  { %v733_v57 = vmax.f32 %v725_v56, 0.0  ;;  %v736_v58 = vmul.f32 %v734_v55, %v734_v55  ;;  %v3585_v56 = vld [vmem:[%s5003_s3 + $0x68] sm:$0xff] }
 0x788   :  { %v740_v59 = vsel %vm135_vm1, %v736_v58, 0.0  ;;  %v735_v60 = vmul.f32 %v733_v57, %v733_v57 }
 0x789   :  { %741 = vadd.xlane.f32.xlu1 %v740_v59 }
 0x78a   :  { %v737_v61 = vsel %vm135_vm1, %v735_v60, 0.0 }
 0x78b   :  { %738 = vadd.xlane.f32.xlu0 %v737_v61 }
 0x812   :  { %v742_v2 = vpop.xlane.xlu1 %741 }
 0x813   :  { %v744_v3 = vmax.f32 %v742_v2, 1e-24  ;;  %v3590_v2 = vld [vmem:[%s5004_s4 + $0x3] sm:$0x1] }
 0x814   :  { %v739_v4 = vpop.xlane.xlu0 %738 }
 0x815   :  { %4155 = vrsqrt.f32 %v744_v3  ;;  %v743_v5 = vmax.f32 %v739_v4, 1e-24 }
 0x817   :  { %4157 = vrsqrt.f32 %v743_v5 }
 0x822   :  { %v4156_v6 = vpop.eup %4155 }
 0x823   :  { %v748_v7 = vmul.f32 %v4156_v6, %v734_v55  ;;  %v3586_v55 = vld [vmem:[%s5003_s3 + $0x70] sm:$0xff] }
 0x824   :  { %v4158_v8 = vpop.eup %4157 }
 0x825   :  { %3893 = vmatpush3.xpose.msk.msra.mxu0 %vm135_vm1, %v748_v7  ;;  %v747_v9 = vmul.f32 %v4158_v8, %v733_v57  ;;  %v3584_v57 = vld [vmem:[%s5003_s3 + $0x60] sm:$0xff] }
 0x826   :  { %3894 = vmatprep.subr.mxu0 %v4294_v16 }
 0x827   :  { %3889 = vmatprep.mubr.msk.f32.mxu1 %vm135_vm1, %v747_v9 }
 0x828   :  { %3890 = vmatmul.mubr.msk.f32.vlgmr.msra.gmra.mxu1 %vm135_vm1, %v748_v7 }
 0x829   :  { %3895 = vmatpush3.xpose.msk.msra.mxu0 %vm135_vm1, %v747_v9 }
 0x82a   :  { %3906 = vmatprep.subr.mxu0 %v3587_v54 }
 0x82c   :  { %3897 = vmatmul.mubr.msk.f32.vlgmr.msra.gmra.mxu0 %vm135_vm1, %v3576_v10 }
 0x82d   :  { %3907 = vmatpush3.msra.mxu0 %v3587_v54 }
 0x82e   :  { %3908 = vmatprep.subr.mxu0 %v3586_v55 }
 0x82f   :  { %3909 = vmatpush3.msra.mxu0 %v3586_v55 }
 0x830   :  { %3910 = vmatprep.subr.mxu0 %v3585_v56 }
 0x831   :  { %3911 = vmatpush3.msra.mxu0 %v3585_v56 }
 0x832   :  { %3912 = vmatprep.subr.mxu0 %v3584_v57 }
 0x833   :  { %3913 = vmatpush3.msra.mxu0 %v3584_v57 }
 0x8e8   :  { %v3891_v11 = vpop.f32.mrf.mxu1 }
 0x8e9   :  { %919 = vperm.xlu1 %4118, %v3891_v11   ;;  %3899 = vmatprep.subr.mxu1 %v3891_v11 }
 0x8ea   :  { %v826_v12 = vpop.f32.mrf.mxu1  ;;  %3900 = vmatpush3.msra.mxu1 %v3891_v11 }
 0x8eb   :  { %914 = vperm.xlu0 %4119, %v826_v12   ;;  %3901 = vmatprep.subr.mxu1 %v826_v12 }
 0x8ec   :  { %3902 = vmatpush3.msra.mxu1 %v826_v12  ;;  %v906_v13 = vpop.f32.mrf.mxu0 }
 0x8ed   :  { %3917 = vmatprep.subr.mxu1 %v4294_v16  ;;  %v925_v15 = vrot.slane %v906_v13, %v4415_v33 }
 0x8ee   :  { %v3898_v14 = vpop.f32.mrf.mxu0 }
 0x964   :  { %v920_v17 = vpop.permute.xlu1 %919 }
 0x965   :  { %v927_v18 = vadd.f32 %v925_v15, %v920_v17 }
 0x966   :  { %v915_v19 = vpop.permute.xlu0 %914 }
 0x967   :  { %v929_v20 = vmul.f32 0.2, %v927_v18  ;;  %v926_v21 = vadd.f32 %v925_v15, %v915_v19 }
 0x969   :  { %v931_v22 = vmax.f32 %v927_v18, %v929_v20  ;;  %v928_v23 = vmul.f32 0.2, %v926_v21 }
 0x96b   :  { %v933_v24 = vadd.f32 %v931_v22, %v4427_v44  ;;  %v930_v25 = vmax.f32 %v926_v21, %v928_v23 }
 0x96d   :  { %v936_v26 = vmul.f32 1.442695, %v933_v24  ;;  %v932_v27 = vadd.f32 %v930_v25, %v4421_v38 }
 0x96f   :  { %4159 = vpow2.f32 %v936_v26  ;;  %v934_v28 = vmul.f32 1.442695, %v932_v27 }
 0x971   :  { %4161 = vpow2.f32 %v934_v28 }
 0x97c   :  { %v4160_v29 = vpop.eup %4159 }
 0x97d   :  { %v941_v30 = vsel %vm49_vm0, %v4160_v29, 0.0 }
 0x97e   :  { %v4162_v31 = vpop.eup %4161  ;;  %942 = vadd.xlane.f32.xlu0 %v941_v30 }
 0x97f   :  { %v938_v34 = vsel %vm49_vm0, %v4162_v31, 0.0 }
 0x980   :  { %939 = vadd.xlane.f32.xlu1 %v938_v34 }
 0xa07   :  { %v943_v35 = vpop.xlane.xlu0 %942 }
 0xa08   :  { %4163 = vrcp.f32 %v943_v35 }
 0xa09   :  { %v940_v36 = vpop.xlane.xlu1 %939 }
 0xa0a   :  { %4165 = vrcp.f32 %v940_v36 }
 0xa15   :  { %v4164_v37 = vpop.eup %4163 }
 0xa16   :  { %v947_v41 = vmul.f32 %v4164_v37, %v4160_v29 }
 0xa17   :  { %v4166_v39 = vpop.eup %4165 }
 0xa18   :  { %v946_v40 = vmul.f32 %v4166_v39, %v4162_v31  ;;  %v3595_v31 = vld [vmem:[%s5006_s5 + $0x3] ss:$0 sm:$0xff] }
 0xa1a   :  { %3903 = vmatprep.mubr.msk.f32.mxu1 %vm49_vm0, %v946_v40 }
 0xa1b   :  { %3904 = vmatmul.mubr.msk.f32.vlgmr.msra.gmra.mxu1 %vm49_vm0, %v947_v41 }
 0xa1c   :  { %3921 = vmatprep.mubr.msk.f32.mxu1 %vm4295_vm2, %v4294_v16 }
 0xadb   :  { %v3905_v43 = vpop.f32.mrf.mxu1 }
 0xadc   :  { %v1032_v45 = vadd.f32 %v3905_v43, %v3581_v42 }
 0xadd   :  { %v1026_v46 = vpop.f32.mrf.mxu1 }
 0xade   :  { %v1036_v47 = vmax.f32 %v1032_v45, 0.0  ;;  %v1027_v48 = vadd.f32 %v3581_v42, %v1026_v46  ;;  %v3601_v46 = vld [vmem:[%s5003_s3 + $0x98] sm:$0xff] }
 0xae0   :  { %v1035_v49 = vmax.f32 %v1027_v48, 0.0  ;;  %v1038_v50 = vmul.f32 %v1036_v47, %v1036_v47  ;;  %v3599_v48 = vld [vmem:[%s5003_s3 + $0x88] sm:$0xff] }
 0xae2   :  { %v1042_v51 = vsel %vm135_vm1, %v1038_v50, 0.0  ;;  %v1037_v52 = vmul.f32 %v1035_v49, %v1035_v49 }
 0xae3   :  { %1043 = vadd.xlane.f32.xlu1 %v1042_v51 }
 0xae4   :  { %v1039_v53 = vsel %vm135_vm1, %v1037_v52, 0.0 }
 0xae5   :  { %1040 = vadd.xlane.f32.xlu0 %v1039_v53 }
 0xb6c   :  { %v1044_v58 = vpop.xlane.xlu1 %1043 }
 0xb6d   :  { %v1046_v59 = vmax.f32 %v1044_v58, 1e-24  ;;  %v3604_v58 = vld [vmem:[%s5004_s4 + $0x4] sm:$0x1] }
 0xb6e   :  { %v1041_v60 = vpop.xlane.xlu0 %1040 }
 0xb6f   :  { %4167 = vrsqrt.f32 %v1046_v59  ;;  %v1045_v61 = vmax.f32 %v1041_v60, 1e-24 }
 0xb71   :  { %4169 = vrsqrt.f32 %v1045_v61 }
 0xb7c   :  { %v4168_v62 = vpop.eup %4167 }
 0xb7d   :  { %v1050_v63 = vmul.f32 %v4168_v62, %v1036_v47  ;;  %v3600_v47 = vld [vmem:[%s5003_s3 + $0x90] sm:$0xff] }
 0xb7e   :  { %v4170_v0 = vpop.eup %4169 }
 0xb7f   :  { %3918 = vmatpush3.xpose.msk.msra.mxu1 %vm135_vm1, %v1050_v63  ;;  %v1049_v1 = vmul.f32 %v4170_v0, %v1035_v49  ;;  %v3598_v49 = vld [vmem:[%s5003_s3 + $0x80] sm:$0xff] }
 0xb80   :  { %3919 = vmatprep.subr.mxu1 %v4294_v16 }
 0xb81   :  { %3914 = vmatprep.mubr.msk.f32.mxu0 %vm135_vm1, %v1049_v1 }
 0xb82   :  { %3915 = vmatmul.mubr.msk.f32.vlgmr.msra.gmra.mxu0 %vm135_vm1, %v1050_v63 }
 0xb83   :  { %3920 = vmatpush3.xpose.msk.msra.mxu1 %vm135_vm1, %v1049_v1 }
 0xb84   :  { %3931 = vmatprep.subr.mxu1 %v3601_v46 }
 0xb86   :  { %3922 = vmatmul.mubr.msk.f32.vlgmr.msra.gmra.mxu1 %vm135_vm1, %v3590_v2 }
 0xb87   :  { %3932 = vmatpush3.msra.mxu1 %v3601_v46 }
 0xb88   :  { %3933 = vmatprep.subr.mxu1 %v3600_v47 }
 0xb89   :  { %3934 = vmatpush3.msra.mxu1 %v3600_v47 }
 0xb8a   :  { %3935 = vmatprep.subr.mxu1 %v3599_v48 }
 0xb8b   :  { %3936 = vmatpush3.msra.mxu1 %v3599_v48 }
 0xb8c   :  { %3937 = vmatprep.subr.mxu1 %v3598_v49 }
 0xb8d   :  { %3938 = vmatpush3.msra.mxu1 %v3598_v49 }
 0xc42   :  { %v3916_v3 = vpop.f32.mrf.mxu0 }
 0xc43   :  { %1221 = vperm.xlu1 %4118, %v3916_v3   ;;  %3924 = vmatprep.subr.mxu0 %v3916_v3 }
 0xc44   :  { %v1128_v4 = vpop.f32.mrf.mxu0  ;;  %3925 = vmatpush3.msra.mxu0 %v3916_v3 }
 0xc45   :  { %1216 = vperm.xlu0 %4119, %v1128_v4   ;;  %3926 = vmatprep.subr.mxu0 %v1128_v4 }
 0xc46   :  { %3927 = vmatpush3.msra.mxu0 %v1128_v4  ;;  %v1208_v5 = vpop.f32.mrf.mxu1 }
 0xc47   :  { %3942 = vmatprep.subr.mxu0 %v4294_v16  ;;  %v1227_v7 = vrot.slane %v1208_v5, %v4415_v33 }
 0xc48   :  { %v3923_v6 = vpop.f32.mrf.mxu1 }
 0xcbe   :  { %v1222_v8 = vpop.permute.xlu1 %1221 }
 0xcbf   :  { %v1229_v9 = vadd.f32 %v1227_v7, %v1222_v8 }
 0xcc0   :  { %v1217_v10 = vpop.permute.xlu0 %1216 }
 0xcc1   :  { %v1231_v11 = vmul.f32 0.2, %v1229_v9  ;;  %v1228_v12 = vadd.f32 %v1227_v7, %v1217_v10 }
 0xcc3   :  { %v1233_v13 = vmax.f32 %v1229_v9, %v1231_v11  ;;  %v1230_v14 = vmul.f32 0.2, %v1228_v12 }
 0xcc5   :  { %v1235_v15 = vadd.f32 %v1233_v13, %v4427_v44  ;;  %v1232_v17 = vmax.f32 %v1228_v12, %v1230_v14 }
 0xcc7   :  { %v1238_v18 = vmul.f32 1.442695, %v1235_v15  ;;  %v1234_v19 = vadd.f32 %v1232_v17, %v4421_v38 }
 0xcc9   :  { %4171 = vpow2.f32 %v1238_v18  ;;  %v1236_v20 = vmul.f32 1.442695, %v1234_v19 }
 0xccb   :  { %4173 = vpow2.f32 %v1236_v20 }
 0xcd6   :  { %v4172_v21 = vpop.eup %4171 }
 0xcd7   :  { %v1243_v22 = vsel %vm49_vm0, %v4172_v21, 0.0 }
 0xcd8   :  { %v4174_v23 = vpop.eup %4173  ;;  %1244 = vadd.xlane.f32.xlu0 %v1243_v22 }
 0xcd9   :  { %v1240_v24 = vsel %vm49_vm0, %v4174_v23, 0.0 }
 0xcda   :  { %1241 = vadd.xlane.f32.xlu1 %v1240_v24 }
 0xd61   :  { %v1245_v25 = vpop.xlane.xlu0 %1244 }
 0xd62   :  { %4175 = vrcp.f32 %v1245_v25 }
 0xd63   :  { %v1242_v26 = vpop.xlane.xlu1 %1241 }
 0xd64   :  { %4177 = vrcp.f32 %v1242_v26 }
 0xd6f   :  { %v4176_v27 = vpop.eup %4175 }
 0xd70   :  { %v1249_v30 = vmul.f32 %v4176_v27, %v4172_v21 }
 0xd71   :  { %v4178_v28 = vpop.eup %4177 }
 0xd72   :  { %v1248_v29 = vmul.f32 %v4178_v28, %v4174_v23  ;;  %v3609_v23 = vld [vmem:[%s5006_s5 + $0x4] ss:$0 sm:$0xff] }
 0xd74   :  { %3928 = vmatprep.mubr.msk.f32.mxu0 %vm49_vm0, %v1248_v29 }
 0xd75   :  { %3929 = vmatmul.mubr.msk.f32.vlgmr.msra.gmra.mxu0 %vm49_vm0, %v1249_v30 }
 0xd76   :  { %3946 = vmatprep.mubr.msk.f32.mxu0 %vm4295_vm2, %v4294_v16 }
 0xe35   :  { %v3930_v34 = vpop.f32.mrf.mxu0 }
 0xe36   :  { %v1334_v35 = vadd.f32 %v3930_v34, %v3595_v31 }
 0xe37   :  { %v1328_v36 = vpop.f32.mrf.mxu0 }
 0xe38   :  { %v1338_v37 = vmax.f32 %v1334_v35, 0.0  ;;  %v1329_v39 = vadd.f32 %v3595_v31, %v1328_v36  ;;  %v3615_v36 = vld [vmem:[%s5003_s3 + $0xb8] sm:$0xff] }
 0xe3a   :  { %v1337_v40 = vmax.f32 %v1329_v39, 0.0  ;;  %v1340_v41 = vmul.f32 %v1338_v37, %v1338_v37  ;;  %v3613_v39 = vld [vmem:[%s5003_s3 + $0xa8] sm:$0xff] }
 0xe3c   :  { %v1344_v42 = vsel %vm135_vm1, %v1340_v41, 0.0  ;;  %v1339_v43 = vmul.f32 %v1337_v40, %v1337_v40 }
 0xe3d   :  { %1345 = vadd.xlane.f32.xlu1 %v1344_v42 }
 0xe3e   :  { %v1341_v45 = vsel %vm135_vm1, %v1339_v43, 0.0 }
 0xe3f   :  { %1342 = vadd.xlane.f32.xlu0 %v1341_v45 }
 0xec6   :  { %v1346_v50 = vpop.xlane.xlu1 %1345 }
 0xec7   :  { %v1348_v51 = vmax.f32 %v1346_v50, 1e-24  ;;  %v3618_v50 = vld [vmem:[%s5004_s4 + $0x5] sm:$0x1] }
 0xec8   :  { %v1343_v52 = vpop.xlane.xlu0 %1342 }
 0xec9   :  { %4179 = vrsqrt.f32 %v1348_v51  ;;  %v1347_v53 = vmax.f32 %v1343_v52, 1e-24 }
 0xecb   :  { %4181 = vrsqrt.f32 %v1347_v53 }
 0xed6   :  { %v4180_v54 = vpop.eup %4179 }
 0xed7   :  { %v1352_v55 = vmul.f32 %v4180_v54, %v1338_v37  ;;  %v3614_v37 = vld [vmem:[%s5003_s3 + $0xb0] sm:$0xff] }
 0xed8   :  { %v4182_v56 = vpop.eup %4181 }
 0xed9   :  { %3943 = vmatpush3.xpose.msk.msra.mxu0 %vm135_vm1, %v1352_v55  ;;  %v1351_v57 = vmul.f32 %v4182_v56, %v1337_v40  ;;  %v3612_v40 = vld [vmem:[%s5003_s3 + $0xa0] sm:$0xff] }
 0xeda   :  { %3944 = vmatprep.subr.mxu0 %v4294_v16 }
 0xedb   :  { %3939 = vmatprep.mubr.msk.f32.mxu1 %vm135_vm1, %v1351_v57 }
 0xedc   :  { %3940 = vmatmul.mubr.msk.f32.vlgmr.msra.gmra.mxu1 %vm135_vm1, %v1352_v55 }
 0xedd   :  { %3945 = vmatpush3.xpose.msk.msra.mxu0 %vm135_vm1, %v1351_v57 }
 0xede   :  { %3956 = vmatprep.subr.mxu0 %v3615_v36 }
 0xee0   :  { %3947 = vmatmul.mubr.msk.f32.vlgmr.msra.gmra.mxu0 %vm135_vm1, %v3604_v58 }
 0xee1   :  { %3957 = vmatpush3.msra.mxu0 %v3615_v36 }
 0xee2   :  { %3958 = vmatprep.subr.mxu0 %v3614_v37 }
 0xee3   :  { %3959 = vmatpush3.msra.mxu0 %v3614_v37 }
 0xee4   :  { %3960 = vmatprep.subr.mxu0 %v3613_v39 }
 0xee5   :  { %3961 = vmatpush3.msra.mxu0 %v3613_v39  ;;  %v2252_v39 = vld [vmem:[%s5007_s6 + $0x38] sm:$0xff] }
 0xee6   :  { %3962 = vmatprep.subr.mxu0 %v3612_v40 }
 0xee7   :  { %3963 = vmatpush3.msra.mxu0 %v3612_v40  ;;  %v3632_v40 = vld [vmem:[%s5004_s4 + $0x6] sm:$0x1] }
 0xf9c   :  { %v3941_v59 = vpop.f32.mrf.mxu1 }
 0xf9d   :  { %1523 = vperm.xlu1 %4118, %v3941_v59   ;;  %3949 = vmatprep.subr.mxu1 %v3941_v59 }
 0xf9e   :  { %v1430_v60 = vpop.f32.mrf.mxu1  ;;  %3950 = vmatpush3.msra.mxu1 %v3941_v59 }
 0xf9f   :  { %1518 = vperm.xlu0 %4119, %v1430_v60   ;;  %3951 = vmatprep.subr.mxu1 %v1430_v60 }
 0xfa0   :  { %3952 = vmatpush3.msra.mxu1 %v1430_v60  ;;  %v1510_v61 = vpop.f32.mrf.mxu0 }
 0xfa1   :  { %3967 = vmatprep.subr.mxu1 %v4294_v16  ;;  %v1529_v63 = vrot.slane %v1510_v61, %v4415_v33 }
 0xfa2   :  { %v3948_v62 = vpop.f32.mrf.mxu0 }
0x1018   :  { %v1524_v0 = vpop.permute.xlu1 %1523 }
0x1019   :  { %v1531_v1 = vadd.f32 %v1529_v63, %v1524_v0 }
0x101a   :  { %v1519_v2 = vpop.permute.xlu0 %1518 }
0x101b   :  { %v1533_v3 = vmul.f32 0.2, %v1531_v1  ;;  %v1530_v4 = vadd.f32 %v1529_v63, %v1519_v2 }
0x101d   :  { %v1535_v5 = vmax.f32 %v1531_v1, %v1533_v3  ;;  %v1532_v6 = vmul.f32 0.2, %v1530_v4 }
0x101f   :  { %v1537_v7 = vadd.f32 %v1535_v5, %v4427_v44  ;;  %v1534_v8 = vmax.f32 %v1530_v4, %v1532_v6 }
0x1021   :  { %v1540_v9 = vmul.f32 1.442695, %v1537_v7  ;;  %v1536_v10 = vadd.f32 %v1534_v8, %v4421_v38 }
0x1023   :  { %4183 = vpow2.f32 %v1540_v9  ;;  %v1538_v11 = vmul.f32 1.442695, %v1536_v10 }
0x1025   :  { %4185 = vpow2.f32 %v1538_v11 }
0x1030   :  { %v4184_v12 = vpop.eup %4183 }
0x1031   :  { %v1545_v13 = vsel %vm49_vm0, %v4184_v12, 0.0 }
0x1032   :  { %v4186_v14 = vpop.eup %4185  ;;  %1546 = vadd.xlane.f32.xlu0 %v1545_v13 }
0x1033   :  { %v1542_v15 = vsel %vm49_vm0, %v4186_v14, 0.0 }
0x1034   :  { %1543 = vadd.xlane.f32.xlu1 %v1542_v15 }
0x10bb   :  { %v1547_v17 = vpop.xlane.xlu0 %1546 }
0x10bc   :  { %4187 = vrcp.f32 %v1547_v17 }
0x10bd   :  { %v1544_v18 = vpop.xlane.xlu1 %1543 }
0x10be   :  { %4189 = vrcp.f32 %v1544_v18 }
0x10c9   :  { %v4188_v19 = vpop.eup %4187 }
0x10ca   :  { %v1551_v22 = vmul.f32 %v4188_v19, %v4184_v12 }
0x10cb   :  { %v4190_v20 = vpop.eup %4189 }
0x10cc   :  { %v1550_v21 = vmul.f32 %v4190_v20, %v4186_v14 }
0x10ce   :  { %3953 = vmatprep.mubr.msk.f32.mxu1 %vm49_vm0, %v1550_v21 }
0x10cf   :  { %3954 = vmatmul.mubr.msk.f32.vlgmr.msra.gmra.mxu1 %vm49_vm0, %v1551_v22 }
0x10d0   :  { %3971 = vmatprep.mubr.msk.f32.mxu1 %vm4295_vm2, %v4294_v16 }
0x118f   :  { %v3955_v24 = vpop.f32.mrf.mxu1 }
0x1190   :  { %v1636_v25 = vadd.f32 %v3955_v24, %v3609_v23  ;;  %v3629_v24 = vld [vmem:[%s5003_s3 + $0xd8] sm:$0xff] }
0x1191   :  { %v1630_v26 = vpop.f32.mrf.mxu1 }
0x1192   :  { %v1640_v27 = vmax.f32 %v1636_v25, 0.0  ;;  %v1631_v28 = vadd.f32 %v3609_v23, %v1630_v26  ;;  %v3628_v25 = vld [vmem:[%s5003_s3 + $0xd0] sm:$0xff]  ;;  %v3627_v26 = vld [vmem:[%s5003_s3 + $0xc8] sm:$0xff] }
0x1194   :  { %v1639_v29 = vmax.f32 %v1631_v28, 0.0  ;;  %v1642_v30 = vmul.f32 %v1640_v27, %v1640_v27 }
0x1196   :  { %v1646_v31 = vsel %vm135_vm1, %v1642_v30, 0.0  ;;  %v1641_v34 = vmul.f32 %v1639_v29, %v1639_v29 }
0x1197   :  { %1647 = vadd.xlane.f32.xlu1 %v1646_v31 }
0x1198   :  { %v1643_v35 = vsel %vm135_vm1, %v1641_v34, 0.0 }
0x1199   :  { %1644 = vadd.xlane.f32.xlu0 %v1643_v35 }
0x1220   :  { %v1648_v41 = vpop.xlane.xlu1 %1647 }
0x1221   :  { %v1650_v42 = vmax.f32 %v1648_v41, 1e-24  ;;  %v2251_v41 = vld [vmem:[%s5007_s6 + $0x30] sm:$0xff] }
0x1222   :  { %v1645_v43 = vpop.xlane.xlu0 %1644 }
0x1223   :  { %4191 = vrsqrt.f32 %v1650_v42  ;;  %v1649_v45 = vmax.f32 %v1645_v43, 1e-24  ;;  %v2250_v42 = vld [vmem:[%s5007_s6 + $0x28] sm:$0xff]  ;;  %v2249_v43 = vld [vmem:[%s5007_s6 + $0x20] sm:$0xff] }
0x1225   :  { %4193 = vrsqrt.f32 %v1649_v45  ;;  %v2248_v45 = vld [vmem:[%s5007_s6 + $0x18] sm:$0xff] }
0x1230   :  { %v4192_v46 = vpop.eup %4191 }
0x1231   :  { %v1654_v47 = vmul.f32 %v4192_v46, %v1640_v27  ;;  %v3626_v27 = vld [vmem:[%s5003_s3 + $0xc0] sm:$0xff]  ;;  %v2247_v46 = vld [vmem:[%s5007_s6 + $0x10] sm:$0xff]  ;;  %s4305_s3 = smov 64  }
0x1232   :  { %v4194_v48 = vpop.eup %4193 }
0x1233   :  { %3968 = vmatpush3.xpose.msk.msra.mxu1 %vm135_vm1, %v1654_v47  ;;  %v1653_v49 = vmul.f32 %v4194_v48, %v1639_v29  ;;  %v2245_v48 = vld [vmem:[%s5007_s6] sm:$0xff] }
0x1234   :  { %3969 = vmatprep.subr.mxu1 %v4294_v16 }
0x1235   :  { %3964 = vmatprep.mubr.msk.f32.mxu0 %vm135_vm1, %v1653_v49 }
0x1236   :  { %3965 = vmatmul.mubr.msk.f32.vlgmr.msra.gmra.mxu0 %vm135_vm1, %v1654_v47  ;;  %v2246_v47 = vld [vmem:[%s5007_s6 + $0x8] sm:$0xff] }
0x1237   :  { %3970 = vmatpush3.xpose.msk.msra.mxu1 %vm135_vm1, %v1653_v49 }
0x1238   :  { %3981 = vmatprep.subr.mxu1 %v3629_v24 }
0x123a   :  { %3972 = vmatmul.mubr.msk.f32.vlgmr.msra.gmra.mxu1 %vm135_vm1, %v3618_v50 }
0x123b   :  { %3982 = vmatpush3.msra.mxu1 %v3629_v24 }
0x123c   :  { %3983 = vmatprep.subr.mxu1 %v3628_v25 }
0x123d   :  { %3984 = vmatpush3.msra.mxu1 %v3628_v25 }
0x123e   :  { %3985 = vmatprep.subr.mxu1 %v3627_v26 }
0x123f   :  { %3986 = vmatpush3.msra.mxu1 %v3627_v26 }
0x1240   :  { %3987 = vmatprep.subr.mxu1 %v3626_v27 }
0x1241   :  { %3988 = vmatpush3.msra.mxu1 %v3626_v27 }
0x12f6   :  { %v3966_v51 = vpop.f32.mrf.mxu0 }
0x12f7   :  { %1825 = vperm.xlu1 %4118, %v3966_v51   ;;  %3974 = vmatprep.subr.mxu0 %v3966_v51 }
0x12f8   :  { %v1732_v52 = vpop.f32.mrf.mxu0  ;;  %3975 = vmatpush3.msra.mxu0 %v3966_v51 }
0x12f9   :  { %1820 = vperm.xlu0 %4119, %v1732_v52   ;;  %3976 = vmatprep.subr.mxu0 %v1732_v52 }
0x12fa   :  { %3977 = vmatpush3.msra.mxu0 %v1732_v52  ;;  %v1812_v53 = vpop.f32.mrf.mxu1 }
0x12fb   :  { %3992 = vmatprep.subr.mxu0 %v4294_v16  ;;  %v1831_v55 = vrot.slane %v1812_v53, %v4415_v33  ;;  %v4297_v53 = vmov 64  }
0x12fc   :  { %v3973_v54 = vpop.f32.mrf.mxu1 }
0x1372   :  { %v1826_v56 = vpop.permute.xlu1 %1825 }
0x1373   :  { %v1833_v57 = vadd.f32 %v1831_v55, %v1826_v56 }
0x1374   :  { %v1821_v58 = vpop.permute.xlu0 %1820 }
0x1375   :  { %v1835_v59 = vmul.f32 0.2, %v1833_v57  ;;  %v1832_v60 = vadd.f32 %v1831_v55, %v1821_v58 }
0x1377   :  { %v1837_v61 = vmax.f32 %v1833_v57, %v1835_v59  ;;  %v1834_v62 = vmul.f32 0.2, %v1832_v60 }
0x1379   :  { %v1839_v63 = vadd.f32 %v1837_v61, %v4427_v44  ;;  %v1836_v0 = vmax.f32 %v1832_v60, %v1834_v62  ;;  %v4689_v62 = vld [vmem:[%s5005_s1 + $0x8] sm:$0xff] }
0x137b   :  { %v1842_v1 = vmul.f32 1.442695, %v1839_v63  ;;  %v1838_v2 = vadd.f32 %v1836_v0, %v4421_v38  ;;  %v4619_v38 = vld [vmem:[%s5006_s5 + $0x5] ss:$0 sm:$0xff] }
0x137d   :  { %4195 = vpow2.f32 %v1842_v1  ;;  %v1840_v3 = vmul.f32 1.442695, %v1838_v2  ;;  %v4695_v2 = vld [vmem:[%s5005_s1] sm:$0xff]  ;;  %s4301_s1 = smov 96  }
0x137f   :  { %4197 = vpow2.f32 %v1840_v3 }
0x138a   :  { %v4196_v4 = vpop.eup %4195 }
0x138b   :  { %v1847_v5 = vsel %vm49_vm0, %v4196_v4, 0.0 }
0x138c   :  { %v4198_v6 = vpop.eup %4197  ;;  %1848 = vadd.xlane.f32.xlu0 %v1847_v5 }
0x138d   :  { %v1844_v7 = vsel %vm49_vm0, %v4198_v6, 0.0 }
0x138e   :  { %1845 = vadd.xlane.f32.xlu1 %v1844_v7 }
0x1415   :  { %v1849_v8 = vpop.xlane.xlu0 %1848 }
0x1416   :  { %4199 = vrcp.f32 %v1849_v8 }
0x1417   :  { %v1846_v9 = vpop.xlane.xlu1 %1845 }
0x1418   :  { %4201 = vrcp.f32 %v1846_v9 }
0x1423   :  { %v4200_v44 = vpop.eup %4199 }
0x1424   :  { %v1853_v12 = vmul.f32 %v4200_v44, %v4196_v4 }
0x1425   :  { %v4202_v10 = vpop.eup %4201 }
0x1426   :  { %v1852_v11 = vmul.f32 %v4202_v10, %v4198_v6 }
0x1428   :  { %3978 = vmatprep.mubr.msk.f32.mxu0 %vm49_vm0, %v1852_v11 }
0x1429   :  { %3979 = vmatmul.mubr.msk.f32.vlgmr.msra.gmra.mxu0 %vm49_vm0, %v1853_v12  ;;  %v4298_v12 = vmov 65  }
0x142a   :  { %3996 = vmatprep.mubr.msk.f32.mxu0 %vm4295_vm2, %v4294_v16 }
0x14e9   :  { %v3980_v13 = vpop.f32.mrf.mxu0 }
0x14ea   :  { %v1938_v14 = vadd.f32 %v3980_v13, %v4619_v38  ;;  %v4299_v13 = vmov 68  }
0x14eb   :  { %v1932_v15 = vpop.f32.mrf.mxu0 }
0x14ec   :  { %v1942_v17 = vmax.f32 %v1938_v14, 0.0  ;;  %v1933_v18 = vadd.f32 %v4619_v38, %v1932_v15  ;;  %v4300_v14 = vmov 66   ;;  %v4302_v15 = vmov 69  }
0x14ee   :  { %v1941_v19 = vmax.f32 %v1933_v18, 0.0  ;;  %v1944_v20 = vmul.f32 %v1942_v17, %v1942_v17 }
0x14f0   :  { %v1948_v21 = vsel %vm135_vm1, %v1944_v20, 0.0  ;;  %v1943_v22 = vmul.f32 %v1941_v19, %v1941_v19 }
0x14f1   :  { %1949 = vadd.xlane.f32.xlu1 %v1948_v21 }
0x14f2   :  { %v1945_v23 = vsel %vm135_vm1, %v1943_v22, 0.0 }
0x14f3   :  { %1946 = vadd.xlane.f32.xlu0 %v1945_v23 }
0x157a   :  { %v1950_v28 = vpop.xlane.xlu1 %1949 }
0x157b   :  { %v1952_v29 = vmax.f32 %v1950_v28, 1e-24 }
0x157c   :  { %v1947_v30 = vpop.xlane.xlu0 %1946 }
0x157d   :  { %4203 = vrsqrt.f32 %v1952_v29  ;;  %v1951_v31 = vmax.f32 %v1947_v30, 1e-24 }
0x157f   :  { %4205 = vrsqrt.f32 %v1951_v31 }
0x158a   :  { %v4204_v34 = vpop.eup %4203 }
0x158b   :  { %v4637_v35 = vmul.f32 %v4204_v34, %v1942_v17  ;;  %v4304_v17 = vmov 67   ;;  %v2330_v34 = vld [vmem:[%s5008_s7] sm:$0x3f] }
0x158c   :  { %v4206_v36 = vpop.eup %4205 }
0x158d   :  { %3993 = vmatpush3.xpose.msk.msra.mxu0 %vm135_vm1, %v4637_v35  ;;  %v4641_v37 = vmul.f32 %v4206_v36, %v1941_v19 }
0x158e   :  { %3994 = vmatprep.subr.mxu0 %v4294_v16 }
0x158f   :  { %3989 = vmatprep.mubr.msk.f32.mxu1 %vm135_vm1, %v4641_v37 }
0x1590   :  { %3990 = vmatmul.mubr.msk.f32.vlgmr.msra.gmra.mxu1 %vm135_vm1, %v4637_v35 }
0x1591   :  { %3995 = vmatpush3.xpose.msk.msra.mxu0 %vm135_vm1, %v4641_v37 }
0x1592   :  { %2277 = vmatprep.subr.mxu0 %v2252_v39 }
0x1594   :  { %3997 = vmatmul.mubr.msk.f32.vlgmr.msra.gmra.mxu0 %vm135_vm1, %v3632_v40 }
0x1595   :  { %2278 = vmatpush1.msra.mxu0 %v2251_v41  ;;  %2317 = vmatprep.mubr.f32.mxu0 %v4294_v16 }
0x1596   :  { %2279 = vmatprep.subr.mxu0 %v2250_v42 }
0x1597   :  { %2280 = vmatpush1.msra.mxu0 %v2249_v43 }
0x1598   :  { %2281 = vmatprep.subr.mxu0 %v2248_v45 }
0x1599   :  { %2282 = vmatpush1.msra.mxu0 %v2247_v46 }
0x159a   :  { %2283 = vmatprep.subr.mxu0 %v2246_v47  ;;  %v2547_v47 = vsub.s32 1, %v4412_v32 }
0x159b   :  { %2284 = vmatpush1.msra.mxu0 %v2245_v48  ;;  %v2686_v48 = vsub.s32 2, %v4412_v32 }
0x159c   :  { %3640 = vmatmul.mubr.msk.f32.vlgmr.msra.gmra.mxu0 %vm135_vm1, %v4641_v37 }
0x159d   :  { %2323 = vmatprep.mubr.f32.mxu0 %v4294_v16 }
0x15a0   :  { %3641 = vmatmul.mubr.msk.f32.gmra.mxu0 %vm135_vm1, %v4637_v35 }
0x1650   :  { %v3991_v49 = vpop.f32.mrf.mxu1 }
0x1651   :  { %2127 = vperm.xlu1 %4118, %v3991_v49   ;;  %3999 = vmatprep.subr.mxu1 %v3991_v49 }
0x1652   :  { %v2034_v50 = vpop.f32.mrf.mxu1  ;;  %4000 = vmatpush3.msra.mxu1 %v3991_v49  ;;  %v2823_v49 = vsub.s32 3, %v4412_v32 }
0x1653   :  { %2122 = vperm.xlu0 %4119, %v2034_v50   ;;  %4001 = vmatprep.subr.mxu1 %v2034_v50 }
0x1654   :  { %4002 = vmatpush3.msra.mxu1 %v2034_v50  ;;  %v2114_v51 = vpop.f32.mrf.mxu0 }
0x1655   :  { %4006 = vmatprep.subr.mxu1 %v4294_v16  ;;  %4121 = vset.pattern.permute.xlu1 %v4297_v53  ;;  %v2133_v54 = vrot.slane %v2114_v51, %v4415_v33  ;;  %v2960_v51 = vsub.s32 4, %v4412_v32 }
0x1656   :  { %v3998_v52 = vpop.f32.mrf.mxu0 }
0x1657   :  { %4120 = vset.pattern.permute.xlu0 %v4297_v53 }
0x165c   :  { %v4700_v9 = vpop.f32.mrf.mxu0 }
0x165e   :  { %v4702_v44 = vpop.f32.mrf.mxu0 }
0x1660   :  { %v4704_v10 = vpop.f32.mrf.mxu0 }
0x1662   :  { %v4706_v11 = vpop.f32.mrf.mxu0 }
0x16cc   :  { %v2128_v55 = vpop.permute.xlu1 %2127 }
0x16cd   :  { %v2135_v56 = vadd.f32 %v2133_v54, %v2128_v55 }
0x16ce   :  { %v2123_v57 = vpop.permute.xlu0 %2122 }
0x16cf   :  { %v2137_v58 = vmul.f32 0.2, %v2135_v56  ;;  %v2134_v59 = vadd.f32 %v2133_v54, %v2123_v57 }
0x16d1   :  { %v2139_v60 = vmax.f32 %v2135_v56, %v2137_v58  ;;  %v2136_v61 = vmul.f32 0.2, %v2134_v59  ;;  %v3091_v58 = vsub.s32 5, %v4412_v32 }
0x16d3   :  { %v2141_v63 = vadd.f32 %v4689_v62, %v2139_v60  ;;  %v2138_v0 = vmax.f32 %v2134_v59, %v2136_v61 }
0x16d5   :  { %v2144_v1 = vmul.f32 1.442695, %v2141_v63  ;;  %v2140_v3 = vadd.f32 %v4695_v2, %v2138_v0 }
0x16d7   :  { %4207 = vpow2.f32 %v2144_v1  ;;  %v2142_v4 = vmul.f32 1.442695, %v2140_v3 }
0x16d9   :  { %4209 = vpow2.f32 %v2142_v4 }
0x16e4   :  { %v4208_v5 = vpop.eup %4207 }
0x16e5   :  { %v2149_v6 = vsel %vm49_vm0, %v4208_v5, 0.0 }
0x16e6   :  { %v4210_v7 = vpop.eup %4209  ;;  %2150 = vadd.xlane.f32.xlu0 %v2149_v6 }
0x16e7   :  { %v2146_v8 = vsel %vm49_vm0, %v4210_v7, 0.0 }
0x16e8   :  { %2147 = vadd.xlane.f32.xlu1 %v2146_v8 }
0x16f9   :  { %2411 = vperm.xlu1 %4121, %v4706_v11  }
0x16fc   :  { %2406 = vperm.xlu0 %4120, %v4702_v44  }
0x16fd   :  { %4122 = vset.pattern.permute.xlu1 %v4298_v12 }
0x16fe   :  { %2538 = vperm.xlu1 %4122, %v4702_v44  }
0x1700   :  { %4128 = vset.pattern.permute.xlu0 %v4299_v13 }
0x1701   :  { %2955 = vperm.xlu0 %4128, %v4706_v11  }
0x1702   :  { %4123 = vset.pattern.permute.xlu1 %v4300_v14 }
0x1703   :  { %2677 = vperm.xlu1 %4123, %v4702_v44  }
0x1705   :  { %2575 = vrot.lane.b32.xlu0 %v4704_v10, %s4301_s1 }
0x1706   :  { %4130 = vset.pattern.permute.xlu0 %v4302_v15 }
0x1707   :  { %4124 = vset.pattern.permute.xlu1 %v4298_v12 }
0x1708   :  { %2542 = vperm.xlu1 %4124, %v4706_v11  }
0x1709   :  { %2849 = vrot.lane.b32.xlu0 %v4704_v10, %s4303_s30 }
0x170c   :  { %4125 = vset.pattern.permute.xlu1 %v4300_v14 }
0x170d   :  { %2681 = vperm.xlu1 %4125, %v4706_v11  }
0x1711   :  { %4126 = vset.pattern.permute.xlu1 %v4304_v17 }
0x1712   :  { %2814 = vperm.xlu1 %4126, %v4702_v44  }
0x1716   :  { %2818 = vperm.xlu1 %4126, %v4706_v11  }
0x171a   :  { %4127 = vset.pattern.permute.xlu1 %v4299_v13 }
0x171b   :  { %2951 = vperm.xlu1 %4127, %v4702_v44  }
0x171f   :  { %4129 = vset.pattern.permute.xlu1 %v4302_v15 }
0x1720   :  { %3082 = vperm.xlu1 %4129, %v4702_v44  }
0x1724   :  { %3086 = vperm.xlu1 %4129, %v4706_v11  }
0x1728   :  { %2712 = vrot.lane.b32.xlu1 %v4704_v10, %s4305_s3 }
0x172c   :  { %2573 = vrot.lane.b32.xlu1 %v4700_v9, %s4301_s1 }
0x1730   :  { %2710 = vrot.lane.b32.xlu1 %v4700_v9, %s4305_s3 }
0x1734   :  { %2847 = vrot.lane.b32.xlu1 %v4700_v9, %s4303_s30 }
0x176f   :  { %v2151_v18 = vpop.xlane.xlu0 %2150 }
0x1770   :  { %4211 = vrcp.f32 %v2151_v18 }
0x1771   :  { %v2148_v19 = vpop.xlane.xlu1 %2147 }
0x1772   :  { %4213 = vrcp.f32 %v2148_v19 }
0x1775   :  { %v2412_v20 = vpop.permute.xlu1 %2411 }
0x1777   :  { %v2407_v21 = vpop.permute.xlu0 %2406 }
0x1779   :  { %v2539_v22 = vpop.permute.xlu1 %2538 }
0x177c   :  { %v2956_v23 = vpop.permute.xlu0 %2955 }
0x177d   :  { %v4212_v24 = vpop.eup %4211 }
0x177e   :  { %v2678_v25 = vpop.permute.xlu1 %2677  ;;  %v2155_v29 = vmul.f32 %v4212_v24, %v4208_v5 }
0x177f   :  { %v4214_v26 = vpop.eup %4213 }
0x1780   :  { %v2576_v27 = vpop.permute.xlu0 %2575  ;;  %v2154_v28 = vmul.f32 %v4214_v26, %v4210_v7 }
0x1781   :  { %4020 = vmatprep.subr.mxu0 %v2576_v27 }
0x1782   :  { %4003 = vmatprep.mubr.msk.f32.mxu1 %vm49_vm0, %v2154_v28  ;;  %4021 = vmatpush3.msra.mxu0 %v2576_v27 }
0x1783   :  { %v2543_v30 = vpop.permute.xlu1 %2542  ;;  %4004 = vmatmul.mubr.msk.f32.vlgmr.msra.gmra.mxu1 %vm49_vm0, %v2155_v29 }
0x1784   :  { %4007 = vmatpush3.xpose.msk.msra.mxu1 %vm135_vm1, %v4637_v35  ;;  %4010 = vmatprep.mubr.msk.f32.mxu1 %vm4295_vm2, %v4294_v16  ;;  %v4750_v45 = vpop.permute.xlu0 %2849 }
0x1785   :  { %4008 = vmatprep.subr.mxu1 %v4294_v16 }
0x1788   :  { %4009 = vmatpush3.xpose.msk.msra.mxu1 %vm135_vm1, %v4641_v37  ;;  %v2682_v31 = vpop.permute.xlu1 %2681 }
0x1789   :  { %4013 = vmatprep.subr.mxu1 %v4704_v10 }
0x178b   :  { %4011 = vmatmul.mubr.msk.f32.vlgmr.msra.gmra.mxu1 %vm135_vm1, %v2330_v34 }
0x178c   :  { %4014 = vmatpush3.msra.mxu1 %v4704_v10 }
0x178d   :  { %4015 = vmatprep.subr.mxu1 %v4700_v9  ;;  %v2815_v36 = vpop.permute.xlu1 %2814 }
0x178e   :  { %4016 = vmatpush3.msra.mxu1 %v4700_v9 }
0x1791   :  { %v2819_v16 = vpop.permute.xlu1 %2818 }
0x1796   :  { %v2952_v39 = vpop.permute.xlu1 %2951 }
0x179b   :  { %v4745_v40 = vpop.permute.xlu1 %3082 }
0x179f   :  { %v3087_v41 = vpop.permute.xlu1 %3086 }
0x17a3   :  { %v4747_v42 = vpop.permute.xlu1 %2712 }
0x17a4   :  { %4027 = vmatprep.subr.mxu1 %v4747_v42 }
0x17a7   :  { %v2574_v43 = vpop.permute.xlu1 %2573 }
0x17a8   :  { %4022 = vmatprep.subr.mxu0 %v2574_v43 }
0x17a9   :  { %4023 = vmatpush3.msra.mxu0 %v2574_v43 }
0x17aa   :  { %4034 = vmatprep.subr.mxu0 %v4750_v45 }
0x1843   :  { %v4753_v46 = vpop.f32.mrf.mxu1 }
0x1845   :  { %v4758_v50 = vpop.f32.mrf.mxu1 }
0x184b   :  { %v2400_v52 = vpop.f32.mrf.mxu1 }
0x184c   :  { %v2417_v53 = vrot.slane %v2400_v52, %v4415_v33  ;;  %v2548_v54 = vrot.slane %v2400_v52, %v2547_v47  ;;  %v2687_v55 = vrot.slane %v2400_v52, %v2686_v48  ;;  %v2824_v56 = vrot.slane %v2400_v52, %v2823_v49 }
0x184d   :  { %v2961_v57 = vrot.slane %v2400_v52, %v2960_v51  ;;  %v4012_v59 = vpop.f32.mrf.mxu1  ;;  %v3092_v12 = vrot.slane %v2400_v52, %v3091_v58 }
0x184e   :  { %v2418_v60 = vadd.f32 %v2417_v53, %v2407_v21  ;;  %v2419_v61 = vadd.f32 %v2417_v53, %v2412_v20  ;;  %v2549_v63 = vadd.f32 %v2548_v54, %v2539_v22  ;;  %v2688_v0 = vadd.f32 %v2687_v55, %v2678_v25 }
0x184f   :  { %v2689_v1 = vadd.f32 %v2687_v55, %v2682_v31  ;;  %v2826_v3 = vadd.f32 %v2824_v56, %v2819_v16  ;;  %v2550_v6 = vadd.f32 %v2548_v54, %v2543_v30  ;;  %v2963_v10 = vadd.f32 %v2961_v57, %v2956_v23 }
0x1850   :  { %v2420_v4 = vmul.f32 0.2, %v2418_v60  ;;  %v2421_v5 = vmul.f32 0.2, %v2419_v61  ;;  %v2551_v7 = vmul.f32 0.2, %v2549_v63  ;;  %v2825_v15 = vadd.f32 %v2824_v56, %v2815_v36 }
0x1851   :  { %v2690_v8 = vmul.f32 0.2, %v2688_v0  ;;  %v2691_v9 = vmul.f32 0.2, %v2689_v1  ;;  %v2828_v18 = vmul.f32 0.2, %v2826_v3  ;;  %v3094_v24 = vadd.f32 %v3092_v12, %v3087_v41 }
0x1852   :  { %v2422_v13 = vmax.f32 %v2418_v60, %v2420_v4  ;;  %v2423_v14 = vmax.f32 %v2419_v61, %v2421_v5  ;;  %v2553_v17 = vmax.f32 %v2549_v63, %v2551_v7  ;;  %v2552_v19 = vmul.f32 0.2, %v2550_v6 }
0x1853   :  { %v2693_v32 = vmax.f32 %v2689_v1, %v2691_v9  ;;  %v2692_v20 = vmax.f32 %v2688_v0, %v2690_v8  ;;  %v2965_v21 = vmul.f32 0.2, %v2963_v10  ;;  %v2830_v22 = vmax.f32 %v2826_v3, %v2828_v18 }
0x1854   :  { %v2425_v25 = vadd.f32 %v4689_v62, %v2423_v14  ;;  %v2424_v26 = vadd.f32 %v4695_v2, %v2422_v13  ;;  %v2827_v27 = vmul.f32 0.2, %v2825_v15  ;;  %v2962_v28 = vadd.f32 %v2961_v57, %v2952_v39 }
0x1855   :  { %v2967_v29 = vmax.f32 %v2963_v10, %v2965_v21  ;;  %v2695_v23 = vadd.f32 %v4689_v62, %v2693_v32  ;;  %v3096_v30 = vmul.f32 0.2, %v3094_v24  ;;  %v2555_v36 = vadd.f32 %v4695_v2, %v2553_v17 }
0x1856   :  { %v2428_v31 = vmul.f32 1.442695, %v2425_v25  ;;  %v2426_v34 = vmul.f32 1.442695, %v2424_v26  ;;  %v2554_v16 = vmax.f32 %v2550_v6, %v2552_v19  ;;  %v2832_v47 = vadd.f32 %v4689_v62, %v2830_v22 }
0x1857   :  { %v2698_v43 = vmul.f32 1.442695, %v2695_v23  ;;  %v2694_v41 = vadd.f32 %v4695_v2, %v2692_v20  ;;  %v2557_v48 = vmul.f32 1.442695, %v2555_v36  ;;  %v2829_v49 = vmax.f32 %v2825_v15, %v2827_v27 }
0x1858   :  { %4215 = vpow2.f32 %v2428_v31  ;;  %v2964_v51 = vmul.f32 0.2, %v2962_v28  ;;  %v3098_v39 = vmax.f32 %v3094_v24, %v3096_v30  ;;  %v2835_v52 = vmul.f32 1.442695, %v2832_v47  ;;  %v2711_v30 = vpop.permute.xlu1 %2710 }
0x1859   :  { %4217 = vpow2.f32 %v2426_v34  ;;  %v2969_v53 = vadd.f32 %v4689_v62, %v2967_v29  ;;  %v3093_v54 = vadd.f32 %v3092_v12, %v4745_v40  ;;  %v2696_v55 = vmul.f32 1.442695, %v2694_v41 }
0x185a   :  { %4219 = vpow2.f32 %v2698_v43  ;;  %v2556_v56 = vadd.f32 %v4689_v62, %v2554_v16  ;;  %v2966_v57 = vmax.f32 %v2962_v28, %v2964_v51  ;;  %v3100_v59 = vadd.f32 %v4689_v62, %v3098_v39 }
0x185b   :  { %4221 = vpow2.f32 %v2557_v48  ;;  %v2972_v58 = vmul.f32 1.442695, %v2969_v53  ;;  %v3095_v60 = vmul.f32 0.2, %v3093_v54  ;;  %v2831_v63 = vadd.f32 %v4695_v2, %v2829_v49 }
0x185c   :  { %4223 = vpow2.f32 %v2835_v52  ;;  %v2559_v61 = vmul.f32 1.442695, %v2556_v56  ;;  %v3103_v0 = vmul.f32 1.442695, %v3100_v59  ;;  %v2968_v40 = vadd.f32 %v4695_v2, %v2966_v57  ;;  %v2848_v31 = vpop.permute.xlu1 %2847 }
0x185d   :  { %4225 = vpow2.f32 %v2696_v55  ;;  %v3097_v1 = vmax.f32 %v3093_v54, %v3095_v60  ;;  %v2833_v3 = vmul.f32 1.442695, %v2831_v63 }
0x185e   :  { %4227 = vpow2.f32 %v2972_v58  ;;  %v2970_v8 = vmul.f32 1.442695, %v2968_v40  ;;  %v3221_v40 = vld [vmem:[%s5009_s8 + $0x18] sm:$0xff] }
0x185f   :  { %4229 = vpow2.f32 %v2559_v61  ;;  %v3099_v9 = vadd.f32 %v4695_v2, %v3097_v1 }
0x1860   :  { %4231 = vpow2.f32 %v3103_v0 }
0x1861   :  { %4233 = vpow2.f32 %v2833_v3  ;;  %v3101_v15 = vmul.f32 1.442695, %v3099_v9 }
0x1862   :  { %4235 = vpow2.f32 %v2970_v8 }
0x1863   :  { %4237 = vpow2.f32 %v3101_v15  ;;  %v3219_v15 = vld [vmem:[%s5009_s8 + $0x8] sm:$0xff] }
0x1865   :  { %v4216_v4 = vpop.eup %4215 }
0x1866   :  { %v4775_v5 = vpop.eup %4217  ;;  %v2433_v6 = vsel %vm49_vm0, %v4216_v4, 0.0 }
0x1867   :  { %v4778_v7 = vpop.eup %4219  ;;  %2434 = vadd.xlane.f32.xlu1 %v2433_v6  ;;  %v2430_v62 = vsel %vm49_vm0, %v4775_v5, 0.0 }
0x1868   :  { %v4222_v10 = vpop.eup %4221  ;;  %2431 = vadd.xlane.f32.xlu0 %v2430_v62  ;;  %v2703_v12 = vsel %vm49_vm0, %v4778_v7, 0.0 }
0x1869   :  { %v4785_v13 = vpop.eup %4223  ;;  %v2561_v14 = vsel %vm49_vm0, %v4222_v10, 0.0 }
0x186a   :  { %v4788_v17 = vpop.eup %4225  ;;  %v2840_v32 = vsel %vm49_vm0, %v4785_v13, 0.0 }
0x186b   :  { %2704 = vadd.xlane.f32.xlu1 %v2703_v12  ;;  %v4792_v18 = vpop.eup %4227  ;;  %v2700_v2 = vsel %vm49_vm0, %v4788_v17, 0.0 }
0x186c   :  { %2562 = vadd.xlane.f32.xlu0 %v2561_v14  ;;  %v4796_v19 = vpop.eup %4229  ;;  %v2977_v20 = vsel %vm49_vm0, %v4792_v18, 0.0 }
0x186d   :  { %v4800_v21 = vpop.eup %4231  ;;  %v2564_v22 = vsel %vm49_vm0, %v4796_v19, 0.0 }
0x186e   :  { %v4804_v24 = vpop.eup %4233  ;;  %v3108_v25 = vsel %vm49_vm0, %v4800_v21, 0.0 }
0x186f   :  { %2841 = vadd.xlane.f32.xlu1 %v2840_v32  ;;  %v2837_v26 = vsel %vm49_vm0, %v4804_v24, 0.0  ;;  %v4810_v27 = vpop.eup %4235 }
0x1870   :  { %2701 = vadd.xlane.f32.xlu0 %v2700_v2  ;;  %v2974_v28 = vsel %vm49_vm0, %v4810_v27, 0.0  ;;  %v4814_v29 = vpop.eup %4237 }
0x1871   :  { %v3105_v23 = vsel %vm49_vm0, %v4814_v29, 0.0 }
0x1873   :  { %2978 = vadd.xlane.f32.xlu1 %v2977_v20 }
0x1874   :  { %2565 = vadd.xlane.f32.xlu0 %v2564_v22 }
0x1877   :  { %3109 = vadd.xlane.f32.xlu1 %v3108_v25 }
0x1878   :  { %2838 = vadd.xlane.f32.xlu0 %v2837_v26  ;;  %v4290_v26 = vld [vmem:[%s5006_s5 + $0x2] ss:$0 sm:$0xff] }
0x187c   :  { %2975 = vadd.xlane.f32.xlu0 %v2974_v28 }
0x1880   :  { %3106 = vadd.xlane.f32.xlu0 %v3105_v23 }
0x1888   :  { %3115 = vrot.lane.b32.xlu1 %v4702_v44, %s4301_s1 }
0x1896   :  { %3117 = vrot.lane.b32.xlu0 %v4706_v11, %s4301_s1 }
0x18f0   :  { %v2435_v34 = vpop.xlane.xlu1 %2434 }
0x18f1   :  { %4239 = vrcp.f32 %v2435_v34  ;;  %v2432_v36 = vpop.xlane.xlu0 %2431 }
0x18f2   :  { %4241 = vrcp.f32 %v2432_v36 }
0x18f4   :  { %v2705_v16 = vpop.xlane.xlu1 %2704 }
0x18f5   :  { %v2563_v43 = vpop.xlane.xlu0 %2562 }
0x18f6   :  { %4243 = vrcp.f32 %v2563_v43 }
0x18f7   :  { %4245 = vrcp.f32 %v2705_v16 }
0x18f8   :  { %v2842_v41 = vpop.xlane.xlu1 %2841 }
0x18f9   :  { %v2702_v47 = vpop.xlane.xlu0 %2701 }
0x18fa   :  { %4247 = vrcp.f32 %v2702_v47 }
0x18fc   :  { %v2979_v52 = vpop.xlane.xlu1 %2978 }
0x18fd   :  { %v2566_v48 = vpop.xlane.xlu0 %2565 }
0x18fe   :  { %v4240_v49 = vpop.eup %4239  ;;  %4249 = vrcp.f32 %v2566_v48 }
0x18ff   :  { %v4242_v51 = vpop.eup %4241  ;;  %v2439_v39 = vmul.f32 %v4240_v49, %v4216_v4  ;;  %4251 = vrcp.f32 %v2842_v41 }
0x1900   :  { %v2438_v53 = vmul.f32 %v4242_v51, %v4775_v5  ;;  %v3110_v59 = vpop.xlane.xlu1 %3109 }
0x1901   :  { %v2839_v54 = vpop.xlane.xlu0 %2838 }
0x1902   :  { %4253 = vrcp.f32 %v2839_v54  ;;  %4017 = vmatprep.mubr.msk.f32.mxu1 %vm49_vm0, %v2438_v53 }
0x1903   :  { %v4244_v55 = vpop.eup %4243  ;;  %4018 = vmatmul.mubr.msk.f32.vlgmr.msra.gmra.mxu1 %vm49_vm0, %v2439_v39  ;;  %4255 = vrcp.f32 %v2979_v52  ;;  %v4292_v39 = vld [vmem:[%s5006_s5 + $0x3] ss:$0 sm:$0xff] }
0x1904   :  { %4028 = vmatpush3.msra.mxu1 %v4747_v42  ;;  %v2569_v56 = vmul.f32 %v4244_v55, %v4222_v10  ;;  %v4246_v58 = vpop.eup %4245  ;;  %v3116_v62 = vpop.permute.xlu1 %3115 }
0x1905   :  { %4029 = vmatprep.subr.mxu1 %v2711_v30  ;;  %v2976_v57 = vpop.xlane.xlu0 %2975  ;;  %v2709_v0 = vmul.f32 %v4246_v58, %v4778_v7 }
0x1906   :  { %4030 = vmatpush3.msra.mxu1 %v2711_v30  ;;  %4257 = vrcp.f32 %v2976_v57  ;;  %4024 = vmatprep.mubr.msk.f32.mxu0 %vm49_vm0, %v2569_v56 }
0x1907   :  { %v4248_v60 = vpop.eup %4247  ;;  %4041 = vmatprep.subr.mxu1 %v4706_v11  ;;  %4259 = vrcp.f32 %v3110_v59 }
0x1908   :  { %v2708_v61 = vmul.f32 %v4248_v60, %v4788_v17  ;;  %v3218_v17 = vld [vmem:[%s5009_s8] sm:$0xff] }
0x1909   :  { %v3107_v63 = vpop.xlane.xlu0 %3106 }
0x190a   :  { %4261 = vrcp.f32 %v3107_v63  ;;  %4031 = vmatprep.mubr.msk.f32.mxu1 %vm49_vm0, %v2708_v61 }
0x190b   :  { %v4250_v42 = vpop.eup %4249  ;;  %4032 = vmatmul.mubr.msk.f32.vlgmr.msra.gmra.mxu1 %vm49_vm0, %v2709_v0  ;;  %v4293_v0 = vld [vmem:[%s5006_s5 + $0x4] ss:$0 sm:$0xff] }
0x190c   :  { %v2570_v1 = vmul.f32 %v4250_v42, %v4796_v19  ;;  %4042 = vmatpush3.msra.mxu1 %v4706_v11  ;;  %v4252_v3 = vpop.eup %4251 }
0x190d   :  { %4043 = vmatprep.subr.mxu1 %v4702_v44  ;;  %v3118_v6 = vpop.permute.xlu0 %3117  ;;  %v2846_v11 = vmul.f32 %v4252_v3, %v4785_v13  ;;  %v3220_v13 = vld [vmem:[%s5009_s8 + $0x10] sm:$0xff] }
0x190e   :  { %4044 = vmatpush3.msra.mxu1 %v4702_v44  ;;  %4025 = vmatmul.mubr.msk.f32.vlgmr.msra.gmra.mxu0 %vm49_vm0, %v2570_v1 }
0x190f   :  { %v4254_v4 = vpop.eup %4253  ;;  %4035 = vmatpush3.msra.mxu0 %v4750_v45  ;;  %4098 = vmatprep.subr.mxu1 %v3221_v40 }
0x1910   :  { %4036 = vmatprep.subr.mxu0 %v2848_v31  ;;  %v2845_v5 = vmul.f32 %v4254_v4, %v4804_v24  ;;  %v4256_v7 = vpop.eup %4255 }
0x1911   :  { %4037 = vmatpush3.msra.mxu0 %v2848_v31  ;;  %v2983_v45 = vmul.f32 %v4256_v7, %v4792_v18  ;;  %v4291_v31 = vld [vmem:[%s5006_s5 + $0x1] ss:$0 sm:$0xff] }
0x1912   :  { %4048 = vmatprep.subr.mxu0 %v3118_v6  ;;  %4038 = vmatprep.mubr.msk.f32.mxu0 %vm49_vm0, %v2845_v5 }
0x1913   :  { %v4258_v44 = vpop.eup %4257  ;;  %4039 = vmatmul.mubr.msk.f32.vlgmr.msra.gmra.mxu0 %vm49_vm0, %v2846_v11 }
0x1914   :  { %4049 = vmatpush3.msra.mxu0 %v3118_v6  ;;  %v2982_v8 = vmul.f32 %v4258_v44, %v4810_v27  ;;  %v4260_v9 = vpop.eup %4259 }
0x1915   :  { %4050 = vmatprep.subr.mxu0 %v3116_v62  ;;  %v3114_v14 = vmul.f32 %v4260_v9, %v4800_v21 }
0x1916   :  { %4051 = vmatpush3.msra.mxu0 %v3116_v62  ;;  %4045 = vmatprep.mubr.msk.f32.mxu1 %vm49_vm0, %v2982_v8 }
0x1917   :  { %v4262_v10 = vpop.eup %4261  ;;  %4046 = vmatmul.mubr.msk.f32.vlgmr.msra.gmra.mxu1 %vm49_vm0, %v2983_v45  ;;  %4055 = vmatprep.subr.mxu0 %v3221_v40 }
0x1918   :  { %v3113_v12 = vmul.f32 %v4262_v10, %v4814_v29  ;;  %4102 = vmatpush3.msra.mxu1 %v3221_v40 }
0x1919   :  { %4099 = vmatprep.subr.mxu1 %v3220_v13 }
0x191a   :  { %4052 = vmatprep.mubr.msk.f32.mxu0 %vm49_vm0, %v3113_v12  ;;  %4103 = vmatpush3.msra.mxu1 %v3220_v13 }
0x191b   :  { %4053 = vmatmul.mubr.msk.f32.vlgmr.msra.gmra.mxu0 %vm49_vm0, %v3114_v14  ;;  %4100 = vmatprep.subr.mxu1 %v3219_v15 }
0x191c   :  { %4056 = vmatpush3.msra.mxu0 %v3221_v40  ;;  %4063 = vmatprep.mubr.msk.f32.mxu0 %vm135_vm1, %v4641_v37  ;;  %v4289_v37 = vld [vmem:[%s5006_s5] ss:$0 sm:$0xff] }
0x191d   :  { %4057 = vmatprep.subr.mxu0 %v3220_v13  ;;  %4104 = vmatpush3.msra.mxu1 %v3219_v15 }
0x191e   :  { %4058 = vmatpush3.msra.mxu0 %v3220_v13  ;;  %4101 = vmatprep.subr.mxu1 %v3218_v17 }
0x191f   :  { %4059 = vmatprep.subr.mxu0 %v3219_v15  ;;  %4105 = vmatpush3.msra.mxu1 %v3218_v17 }
0x1920   :  { %4060 = vmatpush3.msra.mxu0 %v3219_v15 }
0x1921   :  { %4061 = vmatprep.subr.mxu0 %v3218_v17 }
0x1922   :  { %4062 = vmatpush3.msra.mxu0 %v3218_v17 }
0x1923   :  { %4064 = vmatmul.mubr.msk.f32.vlgmr.msra.gmra.mxu0 %vm135_vm1, %v4637_v35 }
0x19c3   :  { %v4019_v32 = vpop.f32.mrf.mxu1 }
0x19c4   :  { %v2518_v18 = vadd.f32 %v4289_v37, %v4019_v32 }
0x19c5   :  { %v2512_v2 = vpop.f32.mrf.mxu1 }
0x19c6   :  { %v4869_v19 = vmax.f32 %v2518_v18, 0.0  ;;  %v2513_v20 = vadd.f32 %v4289_v37, %v2512_v2 }
0x19c8   :  { %v4871_v21 = vmax.f32 %v2513_v20, 0.0  ;;  %v2524_v22 = vmul.f32 %v4869_v19, %v4869_v19 }
0x19ca   :  { %v2528_v24 = vsel %vm135_vm1, %v2524_v22, 0.0  ;;  %v2523_v35 = vmul.f32 %v4871_v21, %v4871_v21 }
0x19cb   :  { %2529 = vadd.xlane.f32.xlu0 %v2528_v24  ;;  %v4033_v25 = vpop.f32.mrf.mxu1 }
0x19cc   :  { %v2794_v27 = vadd.f32 %v4290_v26, %v4033_v25  ;;  %v2525_v23 = vsel %vm135_vm1, %v2523_v35, 0.0 }
0x19cd   :  { %v2788_v28 = vpop.f32.mrf.mxu1 }
0x19ce   :  { %v4026_v29 = vpop.f32.mrf.mxu0  ;;  %v2789_v30 = vadd.f32 %v4290_v26, %v2788_v28  ;;  %v4885_v16 = vmax.f32 %v2794_v27, 0.0 }
0x19cf   :  { %v2657_v34 = vadd.f32 %v4291_v31, %v4026_v29  ;;  %2526 = vadd.xlane.f32.xlu0 %v2525_v23 }
0x19d0   :  { %v2651_v36 = vpop.f32.mrf.mxu0  ;;  %v4889_v41 = vmax.f32 %v2789_v30, 0.0  ;;  %v2800_v56 = vmul.f32 %v4885_v16, %v4885_v16 }
0x19d1   :  { %v4887_v43 = vmax.f32 %v2657_v34, 0.0  ;;  %v2652_v47 = vadd.f32 %v4291_v31, %v2651_v36 }
0x19d2   :  { %v2799_v61 = vmul.f32 %v4889_v41, %v4889_v41  ;;  %v2804_v3 = vsel %vm135_vm1, %v2800_v56, 0.0 }
0x19d3   :  { %v4891_v48 = vmax.f32 %v2652_v47, 0.0  ;;  %v4040_v49 = vpop.f32.mrf.mxu0  ;;  %v2663_v51 = vmul.f32 %v4887_v43, %v4887_v43 }
0x19d4   :  { %v2931_v52 = vadd.f32 %v4292_v39, %v4040_v49  ;;  %v2801_v11 = vsel %vm135_vm1, %v2799_v61, 0.0 }
0x19d5   :  { %v2925_v53 = vpop.f32.mrf.mxu0  ;;  %v2667_v54 = vsel %vm135_vm1, %v2663_v51, 0.0  ;;  %v2662_v55 = vmul.f32 %v4891_v48, %v4891_v48 }
0x19d6   :  { %v4903_v57 = vmax.f32 %v2931_v52, 0.0  ;;  %v2926_v58 = vadd.f32 %v4292_v39, %v2925_v53  ;;  %2668 = vadd.xlane.f32.xlu1 %v2667_v54 }
0x19d7   :  { %v4047_v59 = vpop.f32.mrf.mxu1  ;;  %v2664_v60 = vsel %vm135_vm1, %v2662_v55, 0.0 }
0x19d8   :  { %v4908_v63 = vmax.f32 %v2926_v58, 0.0  ;;  %v3062_v42 = vadd.f32 %v4293_v0, %v4047_v59  ;;  %2665 = vadd.xlane.f32.xlu0 %v2664_v60  ;;  %v2937_v40 = vmul.f32 %v4903_v57, %v4903_v57 }
0x19d9   :  { %v3056_v1 = vpop.f32.mrf.mxu1 }
0x19da   :  { %v4916_v4 = vmax.f32 %v3062_v42, 0.0  ;;  %v3057_v5 = vadd.f32 %v4293_v0, %v3056_v1  ;;  %2805 = vadd.xlane.f32.xlu1 %v2804_v3  ;;  %v2936_v7 = vmul.f32 %v4908_v63, %v4908_v63  ;;  %v2941_v45 = vsel %vm135_vm1, %v2937_v40, 0.0 }
0x19db   :  { %v4054_v6 = vpop.f32.mrf.mxu0 }
0x19dc   :  { %v4921_v44 = vmax.f32 %v3057_v5, 0.0  ;;  %v3199_v62 = vadd.f32 %v4054_v6, %v4619_v38  ;;  %2802 = vadd.xlane.f32.xlu0 %v2801_v11  ;;  %v3068_v9 = vmul.f32 %v4916_v4, %v4916_v4  ;;  %v2938_v13 = vsel %vm135_vm1, %v2936_v7, 0.0 }
0x19dd   :  { %v3193_v8 = vpop.f32.mrf.mxu0 }
0x19de   :  { %v4927_v10 = vmax.f32 %v3199_v62, 0.0  ;;  %v3194_v12 = vadd.f32 %v4619_v38, %v3193_v8  ;;  %2942 = vadd.xlane.f32.xlu1 %v2941_v45  ;;  %v3067_v14 = vmul.f32 %v4921_v44, %v4921_v44  ;;  %v3072_v17 = vsel %vm135_vm1, %v3068_v9, 0.0 }
0x19e0   :  { %v4933_v15 = vmax.f32 %v3194_v12, 0.0  ;;  %2939 = vadd.xlane.f32.xlu0 %v2938_v13  ;;  %v3205_v32 = vmul.f32 %v4927_v10, %v4927_v10  ;;  %v3069_v37 = vsel %vm135_vm1, %v3067_v14, 0.0 }
0x19e2   :  { %3073 = vadd.xlane.f32.xlu1 %v3072_v17  ;;  %v3204_v38 = vmul.f32 %v4933_v15, %v4933_v15  ;;  %v3209_v18 = vsel %vm135_vm1, %v3205_v32, 0.0  ;;  %v17_v17 = vstv %s5011_s11 }
0x19e3   :  { %18 = vst [vmem:[#allocation2] sm:$0x1] %v17_v17  ;;  %v4065_v32 = vpop.f32.mrf.mxu0 }
0x19e4   :  { %3070 = vadd.xlane.f32.xlu0 %v3069_v37  ;;  %v3206_v2 = vsel %vm135_vm1, %v3204_v38, 0.0 }
0x19e5   :  { %v3337_v37 = vpop.f32.mrf.mxu0 }
0x19e6   :  { %3210 = vadd.xlane.f32.xlu1 %v3209_v18 }
0x19e8   :  { %3207 = vadd.xlane.f32.xlu0 %v3206_v2 }
0x1a54   :  { %v2530_v20 = vpop.xlane.xlu0 %2529 }
0x1a55   :  { %v2532_v22 = vmax.f32 %v2530_v20, 1e-24 }
0x1a57   :  { %4263 = vrsqrt.f32 %v2532_v22  ;;  %v3657_v22 = vld [vmem:[%s5012_s9] ss:$0 sm:$0xff] }
0x1a58   :  { %v2527_v24 = vpop.xlane.xlu0 %2526 }
0x1a59   :  { %v2531_v35 = vmax.f32 %v2527_v24, 1e-24 }
0x1a5b   :  { %4265 = vrsqrt.f32 %v2531_v35 }
0x1a5f   :  { %v2669_v25 = vpop.xlane.xlu1 %2668 }
0x1a60   :  { %v2671_v26 = vmax.f32 %v2669_v25, 1e-24 }
0x1a61   :  { %v2666_v27 = vpop.xlane.xlu0 %2665 }
0x1a62   :  { %v2670_v28 = vmax.f32 %v2666_v27, 1e-24  ;;  %4267 = vrsqrt.f32 %v2671_v26 }
0x1a63   :  { %v2806_v29 = vpop.xlane.xlu1 %2805 }
0x1a64   :  { %4269 = vrsqrt.f32 %v2670_v28  ;;  %v2808_v23 = vmax.f32 %v2806_v29, 1e-24  ;;  %v4264_v34 = vpop.eup %4263  ;;  %v3338_v28 = vadd.f32 %v3657_v22, %v3337_v37 }
0x1a65   :  { %v2803_v30 = vpop.xlane.xlu0 %2802  ;;  %v2536_v53 = vmul.f32 %v4264_v34, %v4869_v19 }
0x1a66   :  { %v2807_v31 = vmax.f32 %v2803_v30, 1e-24  ;;  %4271 = vrsqrt.f32 %v2808_v23  ;;  %v3343_v23 = vadd.f32 %v4065_v32, %v3657_v22  ;;  %v3450_v32 = vld [vmem:[#allocation2] sm:$0x1] }
0x1a67   :  { %v2943_v36 = vpop.xlane.xlu1 %2942  ;;  %v3451_v37 = vmul.f32 8.0, %v3450_v32 }
0x1a68   :  { %v4266_v47 = vpop.eup %4265  ;;  %4273 = vrsqrt.f32 %v2807_v31  ;;  %v2945_v49 = vmax.f32 %v2943_v36, 1e-24 }
0x1a69   :  { %v2940_v51 = vpop.xlane.xlu0 %2939  ;;  %v2535_v39 = vmul.f32 %v4266_v47, %v4871_v21 }
0x1a6a   :  { %v2944_v52 = vmax.f32 %v2940_v51, 1e-24  ;;  %4275 = vrsqrt.f32 %v2945_v49 }
0x1a6b   :  { %v3074_v54 = vpop.xlane.xlu1 %3073  ;;  %4066 = vmatprep.mubr.msk.f32.mxu0 %vm135_vm1, %v2535_v39  ;;  %v3416_v39 = vmax.f32 %v3338_v28, 0.0 }
0x1a6c   :  { %4277 = vrsqrt.f32 %v2944_v52  ;;  %v3076_v55 = vmax.f32 %v3074_v54, 1e-24  ;;  %4067 = vmatmul.mubr.msk.f32.gmra.mxu0 %vm135_vm1, %v2536_v53  ;;  %v3417_v54 = vmax.f32 %v3343_v23, 0.0 }
0x1a6d   :  { %v3071_v56 = vpop.xlane.xlu0 %3070 }
0x1a6e   :  { %v3075_v58 = vmax.f32 %v3071_v56, 1e-24  ;;  %4279 = vrsqrt.f32 %v3076_v55 }
0x1a6f   :  { %v3211_v59 = vpop.xlane.xlu1 %3210  ;;  %v4268_v60 = vpop.eup %4267 }
0x1a70   :  { %4281 = vrsqrt.f32 %v3075_v58  ;;  %v3213_v61 = vmax.f32 %v3211_v59, 1e-24  ;;  %v2675_v1 = vmul.f32 %v4268_v60, %v4887_v43 }
0x1a71   :  { %v4270_v0 = vpop.eup %4269  ;;  %v3208_v21 = vpop.xlane.xlu0 %3207 }
0x1a72   :  { %v3212_v42 = vmax.f32 %v3208_v21, 1e-24  ;;  %v2674_v19 = vmul.f32 %v4270_v0, %v4891_v48  ;;  %4283 = vrsqrt.f32 %v3213_v61 }
0x1a73   :  { %v4272_v3 = vpop.eup %4271 }
0x1a74   :  { %4285 = vrsqrt.f32 %v3212_v42  ;;  %4069 = vmatprep.mubr.msk.f32.mxu0 %vm135_vm1, %v2674_v19  ;;  %v2812_v6 = vmul.f32 %v4272_v3, %v4885_v16  ;;  %v3637_v16 = vld [vmem:[%s5006_s5 + $0x6] ss:$0 sm:$0xff] }
0x1a75   :  { %v4274_v40 = vpop.eup %4273  ;;  %4070 = vmatmul.mubr.msk.f32.gmra.mxu0 %vm135_vm1, %v2675_v1  ;;  %v2235_v12 = vadd.f32 %v3637_v16, %v4758_v50  ;;  %v2240_v13 = vadd.f32 %v4753_v46, %v3637_v16  ;;  %v3449_v50 = vld [vmem:[%s5010_s10 + $0x18] sm:$0xff]  ;;  %v3448_v46 = vld [vmem:[%s5010_s10 + $0x10] sm:$0xff] }
0x1a76   :  { %v2811_v5 = vmul.f32 %v4274_v40, %v4889_v41  ;;  %4087 = vmatprep.subr.mxu0 %v3449_v50 }
0x1a77   :  { %v4276_v11 = vpop.eup %4275  ;;  %v2243_v14 = vmax.f32 %v2235_v12, 0.0  ;;  %4088 = vmatpush3.msra.mxu0 %v3449_v50 }
0x1a78   :  { %4072 = vmatprep.mubr.msk.f32.mxu1 %vm135_vm1, %v2811_v5  ;;  %v2949_v43 = vmul.f32 %v4276_v11, %v4903_v57  ;;  %4089 = vmatprep.subr.mxu0 %v3448_v46 }
0x1a79   :  { %v4278_v7 = vpop.eup %4277  ;;  %4073 = vmatmul.mubr.msk.f32.vlgmr.msra.gmra.mxu1 %vm135_vm1, %v2812_v6  ;;  %4090 = vmatpush3.msra.mxu0 %v3448_v46 }
0x1a7a   :  { %v2948_v48 = vmul.f32 %v4278_v7, %v4908_v63 }
0x1a7b   :  { %v4280_v62 = vpop.eup %4279 }
0x1a7c   :  { %4075 = vmatprep.mubr.msk.f32.mxu1 %vm135_vm1, %v2948_v48  ;;  %v3080_v45 = vmul.f32 %v4280_v62, %v4916_v4  ;;  %v2244_v4 = vmax.f32 %v2240_v13, 0.0 }
0x1a7d   :  { %v4282_v8 = vpop.eup %4281  ;;  %4076 = vmatmul.mubr.msk.f32.gmra.mxu1 %vm135_vm1, %v2949_v43 }
0x1a7e   :  { %v3079_v41 = vmul.f32 %v4282_v8, %v4921_v44 }
0x1a7f   :  { %v4284_v9 = vpop.eup %4283 }
0x1a80   :  { %4078 = vmatprep.mubr.msk.f32.mxu1 %vm135_vm1, %v3079_v41  ;;  %v3217_v44 = vmul.f32 %v4284_v9, %v4927_v10  ;;  %v3447_v10 = vld [vmem:[%s5010_s10 + $0x8] sm:$0xff] }
0x1a81   :  { %v4286_v57 = vpop.eup %4285  ;;  %4079 = vmatmul.mubr.msk.f32.gmra.mxu1 %vm135_vm1, %v3080_v45  ;;  %4091 = vmatprep.subr.mxu0 %v3447_v10 }
0x1a82   :  { %v3216_v63 = vmul.f32 %v4286_v57, %v4933_v15  ;;  %v3446_v15 = vld [vmem:[%s5010_s10] sm:$0xff]  ;;  %4092 = vmatpush3.msra.mxu0 %v3447_v10 }
0x1a83   :  { %4093 = vmatprep.subr.mxu0 %v3446_v15 }
0x1a84   :  { %4081 = vmatprep.mubr.msk.f32.mxu1 %vm135_vm1, %v3216_v63  ;;  %4094 = vmatpush3.msra.mxu0 %v3446_v15 }
0x1a85   :  { %4082 = vmatmul.mubr.msk.f32.gmra.mxu1 %vm135_vm1, %v3217_v44 }
0x1a86   :  { %4084 = vmatprep.mubr.msk.f32.mxu1 %vm135_vm1, %v2243_v14 }
0x1a89   :  { %4085 = vmatmul.mubr.msk.f32.gmra.mxu1 %vm135_vm1, %v2244_v4 }
0x1b2c   :  { %v4068_v38 = vpop.f32.mrf.mxu0 }
0x1b2d   :  { %v3353_v26 = vadd.f32 %v4068_v38, %v3657_v22  ;;  %v3456_v38 = vrot.slane %v3451_v37, %v4415_v33 }
0x1b2e   :  { %v3347_v18 = vpop.f32.mrf.mxu0 }
0x1b2f   :  { %v3348_v25 = vadd.f32 %v3657_v22, %v3347_v18  ;;  %v3419_v47 = vmax.f32 %v3353_v26, 0.0 }
0x1b31   :  { %v3418_v34 = vmax.f32 %v3348_v25, 0.0  ;;  %v3433_v0 = vadd.f32 %v3419_v47, %v3417_v54 }
0x1b33   :  { %v3432_v59 = vadd.f32 %v3418_v34, %v3416_v39 }
0x1b35   :  { %v4071_v2 = vpop.f32.mrf.mxu0 }
0x1b36   :  { %v3363_v30 = vadd.f32 %v4071_v2, %v3657_v22 }
0x1b37   :  { %v3357_v24 = vpop.f32.mrf.mxu0 }
0x1b38   :  { %v3358_v29 = vadd.f32 %v3657_v22, %v3357_v24  ;;  %v3421_v55 = vmax.f32 %v3363_v30, 0.0 }
0x1b39   :  { %v4074_v20 = vpop.f32.mrf.mxu1 }
0x1b3a   :  { %v3373_v49 = vadd.f32 %v4074_v20, %v3657_v22  ;;  %v3420_v52 = vmax.f32 %v3358_v29, 0.0  ;;  %v3435_v40 = vadd.f32 %v3433_v0, %v3421_v55 }
0x1b3b   :  { %v3367_v35 = vpop.f32.mrf.mxu1 }
0x1b3c   :  { %v3368_v36 = vadd.f32 %v3657_v22, %v3367_v35  ;;  %v3423_v21 = vmax.f32 %v3373_v49, 0.0  ;;  %v3434_v1 = vadd.f32 %v3432_v59, %v3420_v52 }
0x1b3d   :  { %v4077_v27 = vpop.f32.mrf.mxu1 }
0x1b3e   :  { %v3383_v56 = vadd.f32 %v4077_v27, %v3657_v22  ;;  %v3422_v60 = vmax.f32 %v3368_v36, 0.0  ;;  %v3437_v62 = vadd.f32 %v3435_v40, %v3423_v21 }
0x1b3f   :  { %v3377_v31 = vpop.f32.mrf.mxu1 }
0x1b40   :  { %v3378_v53 = vadd.f32 %v3657_v22, %v3377_v31  ;;  %v3425_v5 = vmax.f32 %v3383_v56, 0.0  ;;  %v3436_v7 = vadd.f32 %v3434_v1, %v3422_v60 }
0x1b41   :  { %v4080_v51 = vpop.f32.mrf.mxu1 }
0x1b42   :  { %v3393_v42 = vadd.f32 %v4080_v51, %v3657_v22  ;;  %v3424_v3 = vmax.f32 %v3378_v53, 0.0  ;;  %v3439_v12 = vadd.f32 %v3437_v62, %v3425_v5 }
0x1b43   :  { %v3387_v58 = vpop.f32.mrf.mxu1 }
0x1b44   :  { %v3388_v61 = vadd.f32 %v3657_v22, %v3387_v58  ;;  %v3427_v8 = vmax.f32 %v3393_v42, 0.0  ;;  %v3438_v16 = vadd.f32 %v3436_v7, %v3424_v3 }
0x1b45   :  { %v4083_v19 = vpop.f32.mrf.mxu1 }
0x1b46   :  { %v3403_v6 = vadd.f32 %v4083_v19, %v3657_v22  ;;  %v3426_v48 = vmax.f32 %v3388_v61, 0.0  ;;  %v3441_v14 = vadd.f32 %v3439_v12, %v3427_v8 }
0x1b47   :  { %v3397_v11 = vpop.f32.mrf.mxu1 }
0x1b48   :  { %v3398_v43 = vadd.f32 %v3657_v22, %v3397_v11  ;;  %v3429_v57 = vmax.f32 %v3403_v6, 0.0  ;;  %v3440_v13 = vadd.f32 %v3438_v16, %v3426_v48 }
0x1b49   :  { %v4086_v41 = vpop.f32.mrf.mxu1 }
0x1b4a   :  { %v3428_v45 = vmax.f32 %v3398_v43, 0.0  ;;  %v3413_v9 = vadd.f32 %v4086_v41, %v3657_v22  ;;  %v3443_v10 = vadd.f32 %v3441_v14, %v3429_v57 }
0x1b4b   :  { %v3407_v63 = vpop.f32.mrf.mxu1 }
0x1b4c   :  { %v3408_v44 = vadd.f32 %v3657_v22, %v3407_v63  ;;  %v3431_v4 = vmax.f32 %v3413_v9, 0.0  ;;  %v3442_v50 = vadd.f32 %v3440_v13, %v3428_v45 }
0x1b4e   :  { %v3430_v46 = vmax.f32 %v3408_v44, 0.0  ;;  %v3445_v17 = vadd.f32 %v3443_v10, %v3431_v4 }
0x1b50   :  { %v3444_v15 = vadd.f32 %v3442_v50, %v3430_v46 }
0x1b52   :  { %4095 = vmatprep.mubr.msk.f32.mxu0 %vm135_vm1, %v3444_v15 }
0x1b53   :  { %4096 = vmatmul.mubr.msk.f32.vlgmr.msra.gmra.mxu0 %vm135_vm1, %v3445_v17 }
0x1c13   :  { %v4097_v18 = vpop.f32.mrf.mxu0 }
0x1c14   :  { %v3536_v2 = vadd.f32 %v4097_v18, %v3456_v38 }
0x1c15   :  { %v3530_v20 = vpop.f32.mrf.mxu0 }
0x1c16   :  { %3541 = vst.msk [vmem:[%s5013_s12 + $0x8] sm:$0xff] %vm3539_vm3, %v3536_v2  ;;  %v3531_v22 = vadd.f32 %v3530_v20, %v3456_v38 }
0x1c18   :  { %3540 = vst.msk [vmem:[%s5013_s12] sm:$0xff] %vm3539_vm3, %v3531_v22 }

</bundles_post_ra>
